<compile_context>
chip_gen: v6e
topology: v6e:2x2x1
jax: 0.10.0
libtpu: 0.0.40
codegen_flags: <defaults>
</compile_context>

<pallas_src>
import math
import jax
import jax.numpy as jnp
from jax import lax
from jax.experimental import pallas as pl
from jax.experimental.pallas import tpu as pltpu

_LN_EPS = 1e-5


def _layer_norm(v, w, b):
    mu = jnp.mean(v, axis=-1, keepdims=True)
    var = jnp.mean(jnp.square(v - mu), axis=-1, keepdims=True)
    return (v - mu) * lax.rsqrt(var + _LN_EPS) * w + b


# ----------------------------- Pallas kernel -------------------------------- #
def _build_kernel(fused_conv: bool, max_unrolled_lags: int):
    def kernel(x_ref, conv_ref, dskip_ref,
               wglu_ref, bglu_ref,
               ln1w_ref, ln1b_ref,
               w1_ref, b1_ref, w2_ref, b2_ref,
               ln2w_ref, ln2b_ref,
               o_ref):
        B_blk, L, D = x_ref.shape
        BL = B_blk * L

        # Flatten the batch block into the M dimension: every matmul gets a
        # respectable M and the reshape is a pure re-tiling (L % 8, D % 128).
        xf = x_ref[...].astype(jnp.float32).reshape(BL, D)

        if fused_conv:
            # conv_ref: (L, D) per-channel SSM kernel.
            #   y[b, l, h] = sum_j k[j, h] * x[b, l - j, h]   (zero for l - j < 0)
            # Lag shifts via pltpu.roll on the flattened slab (rolling across a
            # batch boundary only produces rows that the causal mask zeroes).
            pos = lax.broadcasted_iota(jnp.int32, (B_blk, L, D), 1).reshape(BL, D)
            if L <= max_unrolled_lags:
                # Small L: full static unroll with independent static rolls.
                y = conv_ref[0:1, :].astype(jnp.float32) * xf
                for j in range(1, L):
                    rolled = pltpu.roll(xf, shift=j, axis=0)
                    kj = conv_ref[j:j + 1, :].astype(jnp.float32)
                    y = y + jnp.where(pos >= j, kj * rolled, 0.0)
            else:
                # Production L: fori_loop over sublane-aligned groups of 8 lags.
                # Bounds trace/bundle size and vreg live ranges; k rows come
                # from an 8-aligned dynamic slice (clean vld), the lag shift is
                # a carried roll-by-1.
                def group(g, carry):
                    y, rolled = carry                      # rolled = xf shifted by g*8
                    base = pl.multiple_of(g * 8, 8)
                    kg = conv_ref[pl.ds(base, 8), :].astype(jnp.float32)   # (8, D)
                    for i in range(8):
                        j = g * 8 + i
                        y = y + jnp.where(pos >= j, kg[i:i + 1, :] * rolled, 0.0)
                        rolled = pltpu.roll(rolled, shift=1, axis=0)
                    return y, rolled
                y, _ = lax.fori_loop(0, L // 8, group, (jnp.zeros_like(xf), xf))
        else:
            # conv_ref: (B_blk, L, D) depthwise conv precomputed by the wrapper
            # (FFT path for production L; keeps the VPU free for the MXU work).
            y = conv_ref[...].astype(jnp.float32).reshape(BL, D)

        # SSM skip connection (D * u) + GELU.
        y = y + dskip_ref[...] * xf
        # TODO(synk): torch nn.GELU default is exact erf; tanh approximation used here.
        y = jax.nn.gelu(y, approximate=True)

        # Fused GLU output projection: one (D, 2D) MXU pass, bf16 operands,
        # f32 accumulation.
        proj = jnp.dot(y.astype(jnp.bfloat16), wglu_ref[...],
                       preferred_element_type=jnp.float32) + bglu_ref[...]
        s4_out = proj[:, :D] * jax.nn.sigmoid(proj[:, D:])

        # Residual + LayerNorm1 (post-norm path).
        h = _layer_norm(xf + s4_out, ln1w_ref[...], ln1b_ref[...])

        # Mlp: Linear -> relu -> Linear (bf16 MXU operands, f32 accumulate).
        f = jnp.dot(h.astype(jnp.bfloat16), w1_ref[...],
                    preferred_element_type=jnp.float32) + b1_ref[...]
        f = jnp.maximum(f, 0.0)                    # activation = F.relu
        f = jnp.dot(f.astype(jnp.bfloat16), w2_ref[...],
                    preferred_element_type=jnp.float32) + b2_ref[...]

        # Residual + LayerNorm2.
        out = _layer_norm(h + f, ln2w_ref[...], ln2b_ref[...])
        o_ref[...] = out.reshape(B_blk, L, D).astype(o_ref.dtype)

    return kernel


# ------------------------------- wrapper ------------------------------------ #
def _fft_causal_depthwise_conv(x, k):
    """Causal depthwise conv along L via FFT (standard S4 path), plain XLA."""
    L = x.shape[1]
    n = 2 * L
    xf = jnp.fft.rfft(x.astype(jnp.float32), n=n, axis=1)
    kf = jnp.fft.rfft(k.astype(jnp.float32), n=n, axis=0)
    y = jnp.fft.irfft(xf * kf[None, :, :], n=n, axis=1)
    return y[:, :L, :].astype(jnp.float32)


def _vmem_capacity_bytes():
    try:
        cap = int(pltpu.get_tpu_info().vmem_capacity_bytes)
        if cap > 0:
            return cap
    except Exception:
        pass
    return 64 * 1024 * 1024          # conservative (v7x per-core) fallback


def _pick_block_b(B, L, D, F, act_budget_bytes):
    """Largest batch block whose activations fit the budget, preferring
    M = block_b*L a multiple of 256 (MXU rows on v6e/v7x) and >= 2 grid steps
    (so the 'parallel' batch axis shards across v7x's two TensorCores)."""
    bytes_per_row = 4 * (12 * D + F)           # rough f32 live-activation bytes per row
    max_rows = max(L, act_budget_bytes // max(bytes_per_row, 1))
    cands = [bb for bb in range(1, B + 1) if B % bb == 0 and bb * L <= max_rows]
    if not cands:
        cands = [1]

    def score(bb):
        m = bb * L
        return (m % 256 == 0, (B // bb) >= 2, m)

    return max(cands, key=score)


def s4_encoder_layer(x, p, *, block_b=None, conv_mode="auto",
                     max_unrolled_lags=64, weight_pipeline_mode=None):
    """conv_mode: 'kernel' (fused roll-based conv), 'fft' (conv precomputed in
    the XLA wrapper), or 'auto' (use FFT once L >= 256 -- the O(L^2) VALU conv
    would otherwise saturate the VPU long before the MXU)."""
    B, L, D = x.shape
    F = p["w1"].shape[1]
    # Lane/sublane alignment: keeps every store a full-width vst and every
    # (BL, D) <-> (B_blk, L, D) reshape a pure re-tiling.
    assert L % 8 == 0, "L must be a multiple of 8"
    assert D % 128 == 0 and F % 128 == 0, "d_model / d_inner must be multiples of 128"
    if conv_mode not in ("auto", "kernel", "fft"):
        raise ValueError(conv_mode)

    fused_conv = conv_mode == "kernel" or (conv_mode == "auto" and L < 256)
    conv_in = p["k"] if fused_conv else _fft_causal_depthwise_conv(x, p["k"])

    # Generation-aware VMEM budget (v5e/v6e: 128 MiB physical, v7x: 64 MiB/TC).
    vmem_cap = _vmem_capacity_bytes()
    vmem_limit = max(min(int(vmem_cap * 0.75), 112 * 1024 * 1024), 32 * 1024 * 1024)

    weight_bytes = sum(int(p[name].size) * p[name].dtype.itemsize
                       for name in ("w_glu", "b_glu", "w1", "b1", "w2", "b2",
                                    "ln1_w", "ln1_b", "ln2_w", "ln2_b", "d_skip"))
    if fused_conv:
        weight_bytes += int(p["k"].size) * p["k"].dtype.itemsize
    weight_buf = 2 if weight_pipeline_mode is None else \
        max(1, getattr(weight_pipeline_mode, "buffer_count", 2))
    act_budget = max(vmem_limit - weight_buf * weight_bytes - 4 * 1024 * 1024,
                     2 * 1024 * 1024)

    if block_b is None:
        block_b = _pick_block_b(B, L, D, F, act_budget)
    assert B % block_b == 0
    n_blocks = B // block_b

    # Grid-invariant operands: constant index maps avoid re-DMA between steps.
    # TODO(synk): on v7x with production-size weights pass
    #   weight_pipeline_mode=pl.Buffered(1) (or pl.ANY + one-time DMA) to drop
    #   the default double-buffered weight residency.
    def wspec(shape):
        n = len(shape)
        if weight_pipeline_mode is None:
            return pl.BlockSpec(shape, lambda b, _n=n: (0,) * _n)
        return pl.BlockSpec(shape, lambda b, _n=n: (0,) * _n,
                            pipeline_mode=weight_pipeline_mode)

    x_spec = pl.BlockSpec((block_b, L, D), lambda b: (b, 0, 0))
    conv_spec = wspec((L, D)) if fused_conv \
        else pl.BlockSpec((block_b, L, D), lambda b: (b, 0, 0))

    in_specs = [
        x_spec,                                   # x batch block
        conv_spec,                                # SSM kernel (L,D) or precomputed conv
        wspec((1, D)),                            # D skip
        wspec((D, 2 * D)), wspec((1, 2 * D)),     # fused GLU projection (bf16 w)
        wspec((1, D)), wspec((1, D)),             # LayerNorm1 w, b
        wspec((D, F)), wspec((1, F)),             # Mlp fc1 (bf16 w)
        wspec((F, D)), wspec((1, D)),             # Mlp fc2 (bf16 w)
        wspec((1, D)), wspec((1, D)),             # LayerNorm2 w, b
    ]

    mm_flops = 2 * B * L * (D * 2 * D + 2 * D * F)
    conv_flops = 2 * B * L * L * D if fused_conv else 0
    bytes_acc = (2 * int(x.size) * x.dtype.itemsize
                 + int(conv_in.size) * conv_in.dtype.itemsize
                 + weight_bytes)
    cost = pl.CostEstimate(flops=int(mm_flops + conv_flops),
                           transcendentals=int(3 * B * L * D),
                           bytes_accessed=int(bytes_acc))

    kernel = _build_kernel(fused_conv, max_unrolled_lags)

    return pl.pallas_call(
        kernel,
        out_shape=jax.ShapeDtypeStruct((B, L, D), x.dtype),
        grid_spec=pltpu.PrefetchScalarGridSpec(
            num_scalar_prefetch=0,
            grid=(n_blocks,),
            in_specs=in_specs,
            out_specs=pl.BlockSpec((block_b, L, D), lambda b: (b, 0, 0)),
        ),
        compiler_params=pltpu.CompilerParams(
            dimension_semantics=("parallel",),     # shards batch across TCs on v7x
            vmem_limit_bytes=int(vmem_limit)),
        cost_estimate=cost,
    )(x, conv_in, p["d_skip"],
      p["w_glu"], p["b_glu"],
      p["ln1_w"], p["ln1_b"],
      p["w1"], p["b1"], p["w2"], p["b2"],
      p["ln2_w"], p["ln2_b"])


# ------------------------ parameter construction (glue) --------------------- #
def make_s4d_kernel(key, H, N, L):
    """Simplified S4D-style diagonal-SSM convolution kernel, shape (L, H)."""
    k_dt, k_cr, k_ci = jax.random.split(key, 3)
    log_dt = (jax.random.uniform(k_dt, (H,)) *
              (math.log(0.1) - math.log(0.001)) + math.log(0.001))
    dt = jnp.exp(log_dt)                                   # (H,)
    n = jnp.arange(N, dtype=jnp.float32)                   # (N,)
    a_re = -0.5
    a_im = jnp.pi * n                                      # S4D-Lin diagonal
    c_re = jax.random.normal(k_cr, (H, N)) * (0.5 ** 0.5)
    c_im = jax.random.normal(k_ci, (H, N)) * (0.5 ** 0.5)
    l = jnp.arange(L, dtype=jnp.float32)                   # (L,)
    theta = dt[:, None, None] * a_im[None, :, None] * l[None, None, :]   # (H,N,L)
    rad = jnp.exp(dt[:, None, None] * a_re * l[None, None, :])           # (H,1,L)
    cr = (c_re * dt[:, None])[:, :, None]
    ci = (c_im * dt[:, None])[:, :, None]
    K = 2.0 * jnp.sum((cr * jnp.cos(theta) - ci * jnp.sin(theta)) * rad, axis=1)
    return K.T.astype(jnp.float32)                         # (L, H)


def init_params(key, d_model, d_inner, seq_len, n_state=16):
    keys = jax.random.split(key, 8)
    D, F = d_model, d_inner
    rn = lambda k, s, sc: (jax.random.normal(k, s) * sc).astype(jnp.float32)
    return {
        "k": make_s4d_kernel(keys[0], D, n_state, seq_len),                # (L, D)
        "d_skip": rn(keys[1], (1, D), 1.0),
        "w_glu": rn(keys[2], (D, 2 * D), 1.0 / math.sqrt(D)).astype(jnp.bfloat16),
        "b_glu": rn(keys[3], (1, 2 * D), 0.02),
        "ln1_w": jnp.ones((1, D), jnp.float32),
        "ln1_b": jnp.zeros((1, D), jnp.float32),
        "w1": rn(keys[4], (D, F), 1.0 / math.sqrt(D)).astype(jnp.bfloat16),
        "b1": rn(keys[5], (1, F), 0.02),
        "w2": rn(keys[6], (F, D), 1.0 / math.sqrt(F)).astype(jnp.bfloat16),
        "b2": rn(keys[7], (1, D), 0.02),
        "ln2_w": jnp.ones((1, D), jnp.float32),
        "ln2_b": jnp.zeros((1, D), jnp.float32),
    }


# --------------------------- pure-JAX reference ------------------------------ #
def reference(x, p):
    B, L, D = x.shape
    x = x.astype(jnp.float32)
    k = p["k"]
    y = jnp.zeros_like(x)
    for j in range(L):
        y = y.at[:, j:, :].add(k[j][None, None, :] * x[:, :L - j, :])
    y = y + p["d_skip"] * x
    y = jax.nn.gelu(y, approximate=True)

    def mm(a, w, b):   # same bf16-operand / f32-accumulate contract as the kernel
        return jnp.dot(a.astype(jnp.bfloat16), w,
                       preferred_element_type=jnp.float32) + b

    proj = mm(y, p["w_glu"], p["b_glu"])
    s4_out = proj[..., :D] * jax.nn.sigmoid(proj[..., D:])
    h = _layer_norm(x + s4_out, p["ln1_w"], p["ln1_b"])
    f = mm(jnp.maximum(mm(h, p["w1"], p["b1"]), 0.0), p["w2"], p["b2"])
    return _layer_norm(h + f, p["ln2_w"], p["ln2_b"])


# ---------------------------------- main ------------------------------------- #
if __name__ == "__main__":
    # Lane-dense small test: D and d_inner multiples of 128, L multiple of 8.
    B, L, D, D_INNER = 8, 16, 128, 256
    key = jax.random.PRNGKey(0)
    kx, kp = jax.random.split(key)
    x = jax.random.normal(kx, (B, L, D), dtype=jnp.float32)
    params = init_params(kp, D, D_INNER, L)

    ref = jax.block_until_ready(reference(x, params))

    # (a) fused in-kernel conv, fully unrolled lag loop (small-L path).
    out_a = jax.block_until_ready(s4_encoder_layer(x, params, conv_mode="kernel"))
    # (b) fused in-kernel conv, grouped fori_loop lag loop (production-L path).
    out_b = jax.block_until_ready(
        s4_encoder_layer(x, params, conv_mode="kernel", max_unrolled_lags=0))
    # (c) conv precomputed via FFT in the wrapper (production-L path).
    out_c = jax.block_until_ready(s4_encoder_layer(x, params, conv_mode="fft"))

    for out in (out_a, out_b, out_c):
        assert out.shape == (B, L, D)
        err = float(jnp.max(jnp.abs(out - ref)))
        assert jnp.allclose(out, ref, rtol=2e-2, atol=2e-2), \
            f"mismatch vs JAX reference (max abs err {err})"
    print("KERNEL_OK")
</pallas_src>

<mosaic_0001>
module attributes {stable_mosaic.version = 11 : i64} {
  func.func @kernel(%arg0: i32, %arg1: memref<4x16x128xf32, #tpu.memory_space<vmem>>, %arg2: memref<16x128xf32, #tpu.memory_space<vmem>>, %arg3: memref<1x128xf32, #tpu.memory_space<vmem>>, %arg4: memref<128x256xbf16, #tpu.memory_space<vmem>>, %arg5: memref<1x256xf32, #tpu.memory_space<vmem>>, %arg6: memref<1x128xf32, #tpu.memory_space<vmem>>, %arg7: memref<1x128xf32, #tpu.memory_space<vmem>>, %arg8: memref<128x256xbf16, #tpu.memory_space<vmem>>, %arg9: memref<1x256xf32, #tpu.memory_space<vmem>>, %arg10: memref<256x128xbf16, #tpu.memory_space<vmem>>, %arg11: memref<1x128xf32, #tpu.memory_space<vmem>>, %arg12: memref<1x128xf32, #tpu.memory_space<vmem>>, %arg13: memref<1x128xf32, #tpu.memory_space<vmem>>, %arg14: memref<4x16x128xf32, #tpu.memory_space<vmem>>) attributes {dimension_semantics = [#tpu.dimension_semantics<parallel>], iteration_bounds = array<i64: 2>, scalar_prefetch = 0 : i64, scratch_operands = 0 : i64, tpu.core_type = #tpu.core_type<tc>, window_params = [{transform_indices = @transform_0, window_bounds = array<i64: 4, 16, 128>}, {pipeline_mode = #tpu.pipeline_mode<synchronous>, transform_indices = @transform_1, window_bounds = array<i64: 16, 128>}, {pipeline_mode = #tpu.pipeline_mode<synchronous>, transform_indices = @transform_2, window_bounds = array<i64: 1, 128>}, {pipeline_mode = #tpu.pipeline_mode<synchronous>, transform_indices = @transform_3, window_bounds = array<i64: 128, 256>}, {pipeline_mode = #tpu.pipeline_mode<synchronous>, transform_indices = @transform_4, window_bounds = array<i64: 1, 256>}, {pipeline_mode = #tpu.pipeline_mode<synchronous>, transform_indices = @transform_5, window_bounds = array<i64: 1, 128>}, {pipeline_mode = #tpu.pipeline_mode<synchronous>, transform_indices = @transform_6, window_bounds = array<i64: 1, 128>}, {pipeline_mode = #tpu.pipeline_mode<synchronous>, transform_indices = @transform_7, window_bounds = array<i64: 128, 256>}, {pipeline_mode = #tpu.pipeline_mode<synchronous>, transform_indices = @transform_8, window_bounds = array<i64: 1, 256>}, {pipeline_mode = #tpu.pipeline_mode<synchronous>, transform_indices = @transform_9, window_bounds = array<i64: 256, 128>}, {pipeline_mode = #tpu.pipeline_mode<synchronous>, transform_indices = @transform_10, window_bounds = array<i64: 1, 128>}, {pipeline_mode = #tpu.pipeline_mode<synchronous>, transform_indices = @transform_11, window_bounds = array<i64: 1, 128>}, {pipeline_mode = #tpu.pipeline_mode<synchronous>, transform_indices = @transform_12, window_bounds = array<i64: 1, 128>}, {transform_indices = @transform_13, window_bounds = array<i64: 4, 16, 128>}]} {
    %c0 = arith.constant 0 : index
    %c0_0 = arith.constant 0 : index
    %c0_1 = arith.constant 0 : index
    %0 = vector.load %arg1[%c0, %c0_0, %c0_1] : memref<4x16x128xf32, #tpu.memory_space<vmem>>, vector<4x16x128xf32>
    %1 = vector.shape_cast %0 : vector<4x16x128xf32> to vector<64x128xf32>
    %2 = tpu.iota {dimensions = array<i32: 1>} : vector<4x16x128xi32>
    %3 = vector.shape_cast %2 : vector<4x16x128xi32> to vector<64x128xi32>
    %c0_2 = arith.constant 0 : index
    %c0_3 = arith.constant 0 : index
    %4 = vector.load %arg2[%c0_2, %c0_3] : memref<16x128xf32, #tpu.memory_space<vmem>>, vector<1x128xf32>
    %5 = vector.broadcast %4 : vector<1x128xf32> to vector<64x128xf32>
    %6 = arith.mulf %5, %1 : vector<64x128xf32>
    %c1_i32 = arith.constant 1 : i32
    %7 = tpu.dynamic_rotate %1 by %c1_i32 dim 0 : vector<64x128xf32>, i32 -> vector<64x128xf32>
    %c1 = arith.constant 1 : index
    %c0_4 = arith.constant 0 : index
    %8 = vector.load %arg2[%c1, %c0_4] : memref<16x128xf32, #tpu.memory_space<vmem>>, vector<1x128xf32>
    %c1_i32_5 = arith.constant 1 : i32
    %9 = vector.broadcast %c1_i32_5 : i32 to vector<64x128xi32>
    %10 = arith.cmpi sge, %3, %9 : vector<64x128xi32>
    %11 = vector.broadcast %8 : vector<1x128xf32> to vector<64x128xf32>
    %12 = arith.mulf %11, %7 : vector<64x128xf32>
    %cst = arith.constant 0.000000e+00 : f32
    %13 = vector.broadcast %cst : f32 to vector<64x128xf32>
    %14 = arith.select %10, %12, %13 : vector<64x128xi1>, vector<64x128xf32>
    %15 = arith.addf %6, %14 : vector<64x128xf32>
    %c2_i32 = arith.constant 2 : i32
    %16 = tpu.dynamic_rotate %1 by %c2_i32 dim 0 : vector<64x128xf32>, i32 -> vector<64x128xf32>
    %c2 = arith.constant 2 : index
    %c0_6 = arith.constant 0 : index
    %17 = vector.load %arg2[%c2, %c0_6] : memref<16x128xf32, #tpu.memory_space<vmem>>, vector<1x128xf32>
    %c2_i32_7 = arith.constant 2 : i32
    %18 = vector.broadcast %c2_i32_7 : i32 to vector<64x128xi32>
    %19 = arith.cmpi sge, %3, %18 : vector<64x128xi32>
    %20 = vector.broadcast %17 : vector<1x128xf32> to vector<64x128xf32>
    %21 = arith.mulf %20, %16 : vector<64x128xf32>
    %cst_8 = arith.constant 0.000000e+00 : f32
    %22 = vector.broadcast %cst_8 : f32 to vector<64x128xf32>
    %23 = arith.select %19, %21, %22 : vector<64x128xi1>, vector<64x128xf32>
    %24 = arith.addf %15, %23 : vector<64x128xf32>
    %c3_i32 = arith.constant 3 : i32
    %25 = tpu.dynamic_rotate %1 by %c3_i32 dim 0 : vector<64x128xf32>, i32 -> vector<64x128xf32>
    %c3 = arith.constant 3 : index
    %c0_9 = arith.constant 0 : index
    %26 = vector.load %arg2[%c3, %c0_9] : memref<16x128xf32, #tpu.memory_space<vmem>>, vector<1x128xf32>
    %c3_i32_10 = arith.constant 3 : i32
    %27 = vector.broadcast %c3_i32_10 : i32 to vector<64x128xi32>
    %28 = arith.cmpi sge, %3, %27 : vector<64x128xi32>
    %29 = vector.broadcast %26 : vector<1x128xf32> to vector<64x128xf32>
    %30 = arith.mulf %29, %25 : vector<64x128xf32>
    %cst_11 = arith.constant 0.000000e+00 : f32
    %31 = vector.broadcast %cst_11 : f32 to vector<64x128xf32>
    %32 = arith.select %28, %30, %31 : vector<64x128xi1>, vector<64x128xf32>
    %33 = arith.addf %24, %32 : vector<64x128xf32>
    %c4_i32 = arith.constant 4 : i32
    %34 = tpu.dynamic_rotate %1 by %c4_i32 dim 0 : vector<64x128xf32>, i32 -> vector<64x128xf32>
    %c4 = arith.constant 4 : index
    %c0_12 = arith.constant 0 : index
    %35 = vector.load %arg2[%c4, %c0_12] : memref<16x128xf32, #tpu.memory_space<vmem>>, vector<1x128xf32>
    %c4_i32_13 = arith.constant 4 : i32
    %36 = vector.broadcast %c4_i32_13 : i32 to vector<64x128xi32>
    %37 = arith.cmpi sge, %3, %36 : vector<64x128xi32>
    %38 = vector.broadcast %35 : vector<1x128xf32> to vector<64x128xf32>
    %39 = arith.mulf %38, %34 : vector<64x128xf32>
    %cst_14 = arith.constant 0.000000e+00 : f32
    %40 = vector.broadcast %cst_14 : f32 to vector<64x128xf32>
    %41 = arith.select %37, %39, %40 : vector<64x128xi1>, vector<64x128xf32>
    %42 = arith.addf %33, %41 : vector<64x128xf32>
    %c5_i32 = arith.constant 5 : i32
    %43 = tpu.dynamic_rotate %1 by %c5_i32 dim 0 : vector<64x128xf32>, i32 -> vector<64x128xf32>
    %c5 = arith.constant 5 : index
    %c0_15 = arith.constant 0 : index
    %44 = vector.load %arg2[%c5, %c0_15] : memref<16x128xf32, #tpu.memory_space<vmem>>, vector<1x128xf32>
    %c5_i32_16 = arith.constant 5 : i32
    %45 = vector.broadcast %c5_i32_16 : i32 to vector<64x128xi32>
    %46 = arith.cmpi sge, %3, %45 : vector<64x128xi32>
    %47 = vector.broadcast %44 : vector<1x128xf32> to vector<64x128xf32>
    %48 = arith.mulf %47, %43 : vector<64x128xf32>
    %cst_17 = arith.constant 0.000000e+00 : f32
    %49 = vector.broadcast %cst_17 : f32 to vector<64x128xf32>
    %50 = arith.select %46, %48, %49 : vector<64x128xi1>, vector<64x128xf32>
    %51 = arith.addf %42, %50 : vector<64x128xf32>
    %c6_i32 = arith.constant 6 : i32
    %52 = tpu.dynamic_rotate %1 by %c6_i32 dim 0 : vector<64x128xf32>, i32 -> vector<64x128xf32>
    %c6 = arith.constant 6 : index
    %c0_18 = arith.constant 0 : index
    %53 = vector.load %arg2[%c6, %c0_18] : memref<16x128xf32, #tpu.memory_space<vmem>>, vector<1x128xf32>
    %c6_i32_19 = arith.constant 6 : i32
    %54 = vector.broadcast %c6_i32_19 : i32 to vector<64x128xi32>
    %55 = arith.cmpi sge, %3, %54 : vector<64x128xi32>
    %56 = vector.broadcast %53 : vector<1x128xf32> to vector<64x128xf32>
    %57 = arith.mulf %56, %52 : vector<64x128xf32>
    %cst_20 = arith.constant 0.000000e+00 : f32
    %58 = vector.broadcast %cst_20 : f32 to vector<64x128xf32>
    %59 = arith.select %55, %57, %58 : vector<64x128xi1>, vector<64x128xf32>
    %60 = arith.addf %51, %59 : vector<64x128xf32>
    %c7_i32 = arith.constant 7 : i32
    %61 = tpu.dynamic_rotate %1 by %c7_i32 dim 0 : vector<64x128xf32>, i32 -> vector<64x128xf32>
    %c7 = arith.constant 7 : index
    %c0_21 = arith.constant 0 : index
    %62 = vector.load %arg2[%c7, %c0_21] : memref<16x128xf32, #tpu.memory_space<vmem>>, vector<1x128xf32>
    %c7_i32_22 = arith.constant 7 : i32
    %63 = vector.broadcast %c7_i32_22 : i32 to vector<64x128xi32>
    %64 = arith.cmpi sge, %3, %63 : vector<64x128xi32>
    %65 = vector.broadcast %62 : vector<1x128xf32> to vector<64x128xf32>
    %66 = arith.mulf %65, %61 : vector<64x128xf32>
    %cst_23 = arith.constant 0.000000e+00 : f32
    %67 = vector.broadcast %cst_23 : f32 to vector<64x128xf32>
    %68 = arith.select %64, %66, %67 : vector<64x128xi1>, vector<64x128xf32>
    %69 = arith.addf %60, %68 : vector<64x128xf32>
    %c8_i32 = arith.constant 8 : i32
    %70 = tpu.dynamic_rotate %1 by %c8_i32 dim 0 : vector<64x128xf32>, i32 -> vector<64x128xf32>
    %c8 = arith.constant 8 : index
    %c0_24 = arith.constant 0 : index
    %71 = vector.load %arg2[%c8, %c0_24] : memref<16x128xf32, #tpu.memory_space<vmem>>, vector<1x128xf32>
    %c8_i32_25 = arith.constant 8 : i32
    %72 = vector.broadcast %c8_i32_25 : i32 to vector<64x128xi32>
    %73 = arith.cmpi sge, %3, %72 : vector<64x128xi32>
    %74 = vector.broadcast %71 : vector<1x128xf32> to vector<64x128xf32>
    %75 = arith.mulf %74, %70 : vector<64x128xf32>
    %cst_26 = arith.constant 0.000000e+00 : f32
    %76 = vector.broadcast %cst_26 : f32 to vector<64x128xf32>
    %77 = arith.select %73, %75, %76 : vector<64x128xi1>, vector<64x128xf32>
    %78 = arith.addf %69, %77 : vector<64x128xf32>
    %c9_i32 = arith.constant 9 : i32
    %79 = tpu.dynamic_rotate %1 by %c9_i32 dim 0 : vector<64x128xf32>, i32 -> vector<64x128xf32>
    %c9 = arith.constant 9 : index
    %c0_27 = arith.constant 0 : index
    %80 = vector.load %arg2[%c9, %c0_27] : memref<16x128xf32, #tpu.memory_space<vmem>>, vector<1x128xf32>
    %c9_i32_28 = arith.constant 9 : i32
    %81 = vector.broadcast %c9_i32_28 : i32 to vector<64x128xi32>
    %82 = arith.cmpi sge, %3, %81 : vector<64x128xi32>
    %83 = vector.broadcast %80 : vector<1x128xf32> to vector<64x128xf32>
    %84 = arith.mulf %83, %79 : vector<64x128xf32>
    %cst_29 = arith.constant 0.000000e+00 : f32
    %85 = vector.broadcast %cst_29 : f32 to vector<64x128xf32>
    %86 = arith.select %82, %84, %85 : vector<64x128xi1>, vector<64x128xf32>
    %87 = arith.addf %78, %86 : vector<64x128xf32>
    %c10_i32 = arith.constant 10 : i32
    %88 = tpu.dynamic_rotate %1 by %c10_i32 dim 0 : vector<64x128xf32>, i32 -> vector<64x128xf32>
    %c10 = arith.constant 10 : index
    %c0_30 = arith.constant 0 : index
    %89 = vector.load %arg2[%c10, %c0_30] : memref<16x128xf32, #tpu.memory_space<vmem>>, vector<1x128xf32>
    %c10_i32_31 = arith.constant 10 : i32
    %90 = vector.broadcast %c10_i32_31 : i32 to vector<64x128xi32>
    %91 = arith.cmpi sge, %3, %90 : vector<64x128xi32>
    %92 = vector.broadcast %89 : vector<1x128xf32> to vector<64x128xf32>
    %93 = arith.mulf %92, %88 : vector<64x128xf32>
    %cst_32 = arith.constant 0.000000e+00 : f32
    %94 = vector.broadcast %cst_32 : f32 to vector<64x128xf32>
    %95 = arith.select %91, %93, %94 : vector<64x128xi1>, vector<64x128xf32>
    %96 = arith.addf %87, %95 : vector<64x128xf32>
    %c11_i32 = arith.constant 11 : i32
    %97 = tpu.dynamic_rotate %1 by %c11_i32 dim 0 : vector<64x128xf32>, i32 -> vector<64x128xf32>
    %c11 = arith.constant 11 : index
    %c0_33 = arith.constant 0 : index
    %98 = vector.load %arg2[%c11, %c0_33] : memref<16x128xf32, #tpu.memory_space<vmem>>, vector<1x128xf32>
    %c11_i32_34 = arith.constant 11 : i32
    %99 = vector.broadcast %c11_i32_34 : i32 to vector<64x128xi32>
    %100 = arith.cmpi sge, %3, %99 : vector<64x128xi32>
    %101 = vector.broadcast %98 : vector<1x128xf32> to vector<64x128xf32>
    %102 = arith.mulf %101, %97 : vector<64x128xf32>
    %cst_35 = arith.constant 0.000000e+00 : f32
    %103 = vector.broadcast %cst_35 : f32 to vector<64x128xf32>
    %104 = arith.select %100, %102, %103 : vector<64x128xi1>, vector<64x128xf32>
    %105 = arith.addf %96, %104 : vector<64x128xf32>
    %c12_i32 = arith.constant 12 : i32
    %106 = tpu.dynamic_rotate %1 by %c12_i32 dim 0 : vector<64x128xf32>, i32 -> vector<64x128xf32>
    %c12 = arith.constant 12 : index
    %c0_36 = arith.constant 0 : index
    %107 = vector.load %arg2[%c12, %c0_36] : memref<16x128xf32, #tpu.memory_space<vmem>>, vector<1x128xf32>
    %c12_i32_37 = arith.constant 12 : i32
    %108 = vector.broadcast %c12_i32_37 : i32 to vector<64x128xi32>
    %109 = arith.cmpi sge, %3, %108 : vector<64x128xi32>
    %110 = vector.broadcast %107 : vector<1x128xf32> to vector<64x128xf32>
    %111 = arith.mulf %110, %106 : vector<64x128xf32>
    %cst_38 = arith.constant 0.000000e+00 : f32
    %112 = vector.broadcast %cst_38 : f32 to vector<64x128xf32>
    %113 = arith.select %109, %111, %112 : vector<64x128xi1>, vector<64x128xf32>
    %114 = arith.addf %105, %113 : vector<64x128xf32>
    %c13_i32 = arith.constant 13 : i32
    %115 = tpu.dynamic_rotate %1 by %c13_i32 dim 0 : vector<64x128xf32>, i32 -> vector<64x128xf32>
    %c13 = arith.constant 13 : index
    %c0_39 = arith.constant 0 : index
    %116 = vector.load %arg2[%c13, %c0_39] : memref<16x128xf32, #tpu.memory_space<vmem>>, vector<1x128xf32>
    %c13_i32_40 = arith.constant 13 : i32
    %117 = vector.broadcast %c13_i32_40 : i32 to vector<64x128xi32>
    %118 = arith.cmpi sge, %3, %117 : vector<64x128xi32>
    %119 = vector.broadcast %116 : vector<1x128xf32> to vector<64x128xf32>
    %120 = arith.mulf %119, %115 : vector<64x128xf32>
    %cst_41 = arith.constant 0.000000e+00 : f32
    %121 = vector.broadcast %cst_41 : f32 to vector<64x128xf32>
    %122 = arith.select %118, %120, %121 : vector<64x128xi1>, vector<64x128xf32>
    %123 = arith.addf %114, %122 : vector<64x128xf32>
    %c14_i32 = arith.constant 14 : i32
    %124 = tpu.dynamic_rotate %1 by %c14_i32 dim 0 : vector<64x128xf32>, i32 -> vector<64x128xf32>
    %c14 = arith.constant 14 : index
    %c0_42 = arith.constant 0 : index
    %125 = vector.load %arg2[%c14, %c0_42] : memref<16x128xf32, #tpu.memory_space<vmem>>, vector<1x128xf32>
    %c14_i32_43 = arith.constant 14 : i32
    %126 = vector.broadcast %c14_i32_43 : i32 to vector<64x128xi32>
    %127 = arith.cmpi sge, %3, %126 : vector<64x128xi32>
    %128 = vector.broadcast %125 : vector<1x128xf32> to vector<64x128xf32>
    %129 = arith.mulf %128, %124 : vector<64x128xf32>
    %cst_44 = arith.constant 0.000000e+00 : f32
    %130 = vector.broadcast %cst_44 : f32 to vector<64x128xf32>
    %131 = arith.select %127, %129, %130 : vector<64x128xi1>, vector<64x128xf32>
    %132 = arith.addf %123, %131 : vector<64x128xf32>
    %c15_i32 = arith.constant 15 : i32
    %133 = tpu.dynamic_rotate %1 by %c15_i32 dim 0 : vector<64x128xf32>, i32 -> vector<64x128xf32>
    %c15 = arith.constant 15 : index
    %c0_45 = arith.constant 0 : index
    %134 = vector.load %arg2[%c15, %c0_45] : memref<16x128xf32, #tpu.memory_space<vmem>>, vector<1x128xf32>
    %c15_i32_46 = arith.constant 15 : i32
    %135 = vector.broadcast %c15_i32_46 : i32 to vector<64x128xi32>
    %136 = arith.cmpi sge, %3, %135 : vector<64x128xi32>
    %137 = vector.broadcast %134 : vector<1x128xf32> to vector<64x128xf32>
    %138 = arith.mulf %137, %133 : vector<64x128xf32>
    %cst_47 = arith.constant 0.000000e+00 : f32
    %139 = vector.broadcast %cst_47 : f32 to vector<64x128xf32>
    %140 = arith.select %136, %138, %139 : vector<64x128xi1>, vector<64x128xf32>
    %141 = arith.addf %132, %140 : vector<64x128xf32>
    %c0_48 = arith.constant 0 : index
    %c0_49 = arith.constant 0 : index
    %142 = vector.load %arg3[%c0_48, %c0_49] : memref<1x128xf32, #tpu.memory_space<vmem>>, vector<1x128xf32>
    %143 = vector.broadcast %142 : vector<1x128xf32> to vector<64x128xf32>
    %144 = arith.mulf %143, %1 : vector<64x128xf32>
    %145 = arith.addf %141, %144 : vector<64x128xf32>
    %146 = arith.mulf %145, %145 : vector<64x128xf32>
    %147 = arith.mulf %145, %146 : vector<64x128xf32>
    %cst_50 = arith.constant 4.471500e-02 : f32
    %148 = vector.broadcast %cst_50 : f32 to vector<64x128xf32>
    %149 = arith.mulf %148, %147 : vector<64x128xf32>
    %150 = arith.addf %145, %149 : vector<64x128xf32>
    %cst_51 = arith.constant 0.797884583 : f32
    %151 = vector.broadcast %cst_51 : f32 to vector<64x128xf32>
    %152 = arith.mulf %151, %150 : vector<64x128xf32>
    %153 = math.tanh %152 : vector<64x128xf32>
    %cst_52 = arith.constant 1.000000e+00 : f32
    %154 = vector.broadcast %cst_52 : f32 to vector<64x128xf32>
    %155 = arith.addf %154, %153 : vector<64x128xf32>
    %cst_53 = arith.constant 5.000000e-01 : f32
    %156 = vector.broadcast %cst_53 : f32 to vector<64x128xf32>
    %157 = arith.mulf %156, %155 : vector<64x128xf32>
    %158 = arith.mulf %145, %157 : vector<64x128xf32>
    %159 = arith.truncf %158 : vector<64x128xf32> to vector<64x128xbf16>
    %c0_54 = arith.constant 0 : index
    %c0_55 = arith.constant 0 : index
    %160 = vector.load %arg4[%c0_54, %c0_55] : memref<128x256xbf16, #tpu.memory_space<vmem>>, vector<128x256xbf16>
    %cst_56 = arith.constant dense<0.000000e+00> : vector<64x256xf32>
    %161 = tpu.matmul %159, %160, %cst_56 {dimension_numbers = #tpu.dot_dimension_numbers<[1], [0], [0], [1], [0, 0, 1, 1], [], []>} : vector<64x128xbf16>, vector<128x256xbf16>, vector<64x256xf32> -> vector<64x256xf32>
    %c0_57 = arith.constant 0 : index
    %c0_58 = arith.constant 0 : index
    %162 = vector.load %arg5[%c0_57, %c0_58] : memref<1x256xf32, #tpu.memory_space<vmem>>, vector<1x256xf32>
    %163 = vector.broadcast %162 : vector<1x256xf32> to vector<64x256xf32>
    %164 = arith.addf %161, %163 : vector<64x256xf32>
    %165 = vector.extract_strided_slice %164 {offsets = [0, 0], sizes = [64, 128], strides = [1, 1]} : vector<64x256xf32> to vector<64x128xf32>
    %166 = vector.extract_strided_slice %164 {offsets = [0, 128], sizes = [64, 128], strides = [1, 1]} : vector<64x256xf32> to vector<64x128xf32>
    %167 = arith.negf %166 : vector<64x128xf32>
    %168 = math.exp %167 : vector<64x128xf32>
    %cst_59 = arith.constant 1.000000e+00 : f32
    %169 = vector.broadcast %cst_59 : f32 to vector<64x128xf32>
    %170 = arith.addf %169, %168 : vector<64x128xf32>
    %171 = arith.divf %169, %170 : vector<64x128xf32>
    %172 = arith.mulf %165, %171 : vector<64x128xf32>
    %173 = arith.addf %1, %172 : vector<64x128xf32>
    %c0_60 = arith.constant 0 : index
    %c0_61 = arith.constant 0 : index
    %174 = vector.load %arg6[%c0_60, %c0_61] : memref<1x128xf32, #tpu.memory_space<vmem>>, vector<1x128xf32>
    %c0_62 = arith.constant 0 : index
    %c0_63 = arith.constant 0 : index
    %175 = vector.load %arg7[%c0_62, %c0_63] : memref<1x128xf32, #tpu.memory_space<vmem>>, vector<1x128xf32>
    %cst_64 = arith.constant dense<0.000000e+00> : vector<64xf32>
    %176 = vector.multi_reduction <add>, %173, %cst_64 [1] : vector<64x128xf32> to vector<64xf32>
    %177 = vector.shape_cast %176 : vector<64xf32> to vector<64x1xf32>
    %cst_65 = arith.constant 1.280000e+02 : f32
    %178 = vector.broadcast %cst_65 : f32 to vector<64x1xf32>
    %179 = arith.divf %177, %178 : vector<64x1xf32>
    %180 = vector.broadcast %179 : vector<64x1xf32> to vector<64x128xf32>
    %181 = arith.subf %173, %180 : vector<64x128xf32>
    %182 = arith.mulf %181, %181 : vector<64x128xf32>
    %cst_66 = arith.constant dense<0.000000e+00> : vector<64xf32>
    %183 = vector.multi_reduction <add>, %182, %cst_66 [1] : vector<64x128xf32> to vector<64xf32>
    %184 = vector.shape_cast %183 : vector<64xf32> to vector<64x1xf32>
    %cst_67 = arith.constant 1.280000e+02 : f32
    %185 = vector.broadcast %cst_67 : f32 to vector<64x1xf32>
    %186 = arith.divf %184, %185 : vector<64x1xf32>
    %187 = vector.broadcast %179 : vector<64x1xf32> to vector<64x128xf32>
    %188 = arith.subf %173, %187 : vector<64x128xf32>
    %cst_68 = arith.constant 9.99999974E-6 : f32
    %189 = vector.broadcast %cst_68 : f32 to vector<64x1xf32>
    %190 = arith.addf %186, %189 : vector<64x1xf32>
    %191 = math.rsqrt %190 : vector<64x1xf32>
    %192 = vector.broadcast %191 : vector<64x1xf32> to vector<64x128xf32>
    %193 = arith.mulf %188, %192 : vector<64x128xf32>
    %194 = vector.broadcast %174 : vector<1x128xf32> to vector<64x128xf32>
    %195 = arith.mulf %193, %194 : vector<64x128xf32>
    %196 = vector.broadcast %175 : vector<1x128xf32> to vector<64x128xf32>
    %197 = arith.addf %195, %196 : vector<64x128xf32>
    %198 = arith.truncf %197 : vector<64x128xf32> to vector<64x128xbf16>
    %c0_69 = arith.constant 0 : index
    %c0_70 = arith.constant 0 : index
    %199 = vector.load %arg8[%c0_69, %c0_70] : memref<128x256xbf16, #tpu.memory_space<vmem>>, vector<128x256xbf16>
    %cst_71 = arith.constant dense<0.000000e+00> : vector<64x256xf32>
    %200 = tpu.matmul %198, %199, %cst_71 {dimension_numbers = #tpu.dot_dimension_numbers<[1], [0], [0], [1], [0, 0, 1, 1], [], []>} : vector<64x128xbf16>, vector<128x256xbf16>, vector<64x256xf32> -> vector<64x256xf32>
    %c0_72 = arith.constant 0 : index
    %c0_73 = arith.constant 0 : index
    %201 = vector.load %arg9[%c0_72, %c0_73] : memref<1x256xf32, #tpu.memory_space<vmem>>, vector<1x256xf32>
    %202 = vector.broadcast %201 : vector<1x256xf32> to vector<64x256xf32>
    %203 = arith.addf %200, %202 : vector<64x256xf32>
    %cst_74 = arith.constant 0.000000e+00 : f32
    %204 = vector.broadcast %cst_74 : f32 to vector<64x256xf32>
    %205 = arith.maximumf %203, %204 : vector<64x256xf32>
    %206 = arith.truncf %205 : vector<64x256xf32> to vector<64x256xbf16>
    %c0_75 = arith.constant 0 : index
    %c0_76 = arith.constant 0 : index
    %207 = vector.load %arg10[%c0_75, %c0_76] : memref<256x128xbf16, #tpu.memory_space<vmem>>, vector<256x128xbf16>
    %cst_77 = arith.constant dense<0.000000e+00> : vector<64x128xf32>
    %208 = tpu.matmul %206, %207, %cst_77 {dimension_numbers = #tpu.dot_dimension_numbers<[1], [0], [0], [1], [0, 0, 1, 1], [], []>} : vector<64x256xbf16>, vector<256x128xbf16>, vector<64x128xf32> -> vector<64x128xf32>
    %c0_78 = arith.constant 0 : index
    %c0_79 = arith.constant 0 : index
    %209 = vector.load %arg11[%c0_78, %c0_79] : memref<1x128xf32, #tpu.memory_space<vmem>>, vector<1x128xf32>
    %210 = vector.broadcast %209 : vector<1x128xf32> to vector<64x128xf32>
    %211 = arith.addf %208, %210 : vector<64x128xf32>
    %212 = arith.addf %197, %211 : vector<64x128xf32>
    %c0_80 = arith.constant 0 : index
    %c0_81 = arith.constant 0 : index
    %213 = vector.load %arg12[%c0_80, %c0_81] : memref<1x128xf32, #tpu.memory_space<vmem>>, vector<1x128xf32>
    %c0_82 = arith.constant 0 : index
    %c0_83 = arith.constant 0 : index
    %214 = vector.load %arg13[%c0_82, %c0_83] : memref<1x128xf32, #tpu.memory_space<vmem>>, vector<1x128xf32>
    %cst_84 = arith.constant dense<0.000000e+00> : vector<64xf32>
    %215 = vector.multi_reduction <add>, %212, %cst_84 [1] : vector<64x128xf32> to vector<64xf32>
    %216 = vector.shape_cast %215 : vector<64xf32> to vector<64x1xf32>
    %cst_85 = arith.constant 1.280000e+02 : f32
    %217 = vector.broadcast %cst_85 : f32 to vector<64x1xf32>
    %218 = arith.divf %216, %217 : vector<64x1xf32>
    %219 = vector.broadcast %218 : vector<64x1xf32> to vector<64x128xf32>
    %220 = arith.subf %212, %219 : vector<64x128xf32>
    %221 = arith.mulf %220, %220 : vector<64x128xf32>
    %cst_86 = arith.constant dense<0.000000e+00> : vector<64xf32>
    %222 = vector.multi_reduction <add>, %221, %cst_86 [1] : vector<64x128xf32> to vector<64xf32>
    %223 = vector.shape_cast %222 : vector<64xf32> to vector<64x1xf32>
    %cst_87 = arith.constant 1.280000e+02 : f32
    %224 = vector.broadcast %cst_87 : f32 to vector<64x1xf32>
    %225 = arith.divf %223, %224 : vector<64x1xf32>
    %226 = vector.broadcast %218 : vector<64x1xf32> to vector<64x128xf32>
    %227 = arith.subf %212, %226 : vector<64x128xf32>
    %cst_88 = arith.constant 9.99999974E-6 : f32
    %228 = vector.broadcast %cst_88 : f32 to vector<64x1xf32>
    %229 = arith.addf %225, %228 : vector<64x1xf32>
    %230 = math.rsqrt %229 : vector<64x1xf32>
    %231 = vector.broadcast %230 : vector<64x1xf32> to vector<64x128xf32>
    %232 = arith.mulf %227, %231 : vector<64x128xf32>
    %233 = vector.broadcast %213 : vector<1x128xf32> to vector<64x128xf32>
    %234 = arith.mulf %232, %233 : vector<64x128xf32>
    %235 = vector.broadcast %214 : vector<1x128xf32> to vector<64x128xf32>
    %236 = arith.addf %234, %235 : vector<64x128xf32>
    %237 = vector.shape_cast %236 : vector<64x128xf32> to vector<4x16x128xf32>
    %c0_89 = arith.constant 0 : index
    %c0_90 = arith.constant 0 : index
    %c0_91 = arith.constant 0 : index
    %238 = vector.load %arg14[%c0_89, %c0_90, %c0_91] : memref<4x16x128xf32, #tpu.memory_space<vmem>>, vector<4x16x128xf32>
    tpu.vector_store %arg14[%c0_89, %c0_90, %c0_91], %237 {strides = array<i32>} : memref<4x16x128xf32, #tpu.memory_space<vmem>>, vector<4x16x128xf32>,
    return
  }
  func.func @transform_0(%arg0: i32) -> (i32, i32, i32) {
    %c0_i32 = arith.constant 0 : i32
    %c0_i32_0 = arith.constant 0 : i32
    %c0_i32_1 = arith.constant 0 : i32
    return %arg0, %c0_i32, %c0_i32_0 : i32, i32, i32
  }
  func.func @transform_1(%arg0: i32) -> (i32, i32) {
    %c0_i32 = arith.constant 0 : i32
    %c0_i32_0 = arith.constant 0 : i32
    %c0_i32_1 = arith.constant 0 : i32
    return %c0_i32, %c0_i32_0 : i32, i32
  }
  func.func @transform_2(%arg0: i32) -> (i32, i32) {
    %c0_i32 = arith.constant 0 : i32
    %c0_i32_0 = arith.constant 0 : i32
    %c0_i32_1 = arith.constant 0 : i32
    return %c0_i32, %c0_i32_0 : i32, i32
  }
  func.func @transform_3(%arg0: i32) -> (i32, i32) {
    %c0_i32 = arith.constant 0 : i32
    %c0_i32_0 = arith.constant 0 : i32
    %c0_i32_1 = arith.constant 0 : i32
    return %c0_i32, %c0_i32_0 : i32, i32
  }
  func.func @transform_4(%arg0: i32) -> (i32, i32) {
    %c0_i32 = arith.constant 0 : i32
    %c0_i32_0 = arith.constant 0 : i32
    %c0_i32_1 = arith.constant 0 : i32
    return %c0_i32, %c0_i32_0 : i32, i32
  }
  func.func @transform_5(%arg0: i32) -> (i32, i32) {
    %c0_i32 = arith.constant 0 : i32
    %c0_i32_0 = arith.constant 0 : i32
    %c0_i32_1 = arith.constant 0 : i32
    return %c0_i32, %c0_i32_0 : i32, i32
  }
  func.func @transform_6(%arg0: i32) -> (i32, i32) {
    %c0_i32 = arith.constant 0 : i32
    %c0_i32_0 = arith.constant 0 : i32
    %c0_i32_1 = arith.constant 0 : i32
    return %c0_i32, %c0_i32_0 : i32, i32
  }
  func.func @transform_7(%arg0: i32) -> (i32, i32) {
    %c0_i32 = arith.constant 0 : i32
    %c0_i32_0 = arith.constant 0 : i32
    %c0_i32_1 = arith.constant 0 : i32
    return %c0_i32, %c0_i32_0 : i32, i32
  }
  func.func @transform_8(%arg0: i32) -> (i32, i32) {
    %c0_i32 = arith.constant 0 : i32
    %c0_i32_0 = arith.constant 0 : i32
    %c0_i32_1 = arith.constant 0 : i32
    return %c0_i32, %c0_i32_0 : i32, i32
  }
  func.func @transform_9(%arg0: i32) -> (i32, i32) {
    %c0_i32 = arith.constant 0 : i32
    %c0_i32_0 = arith.constant 0 : i32
    %c0_i32_1 = arith.constant 0 : i32
    return %c0_i32, %c0_i32_0 : i32, i32
  }
  func.func @transform_10(%arg0: i32) -> (i32, i32) {
    %c0_i32 = arith.constant 0 : i32
    %c0_i32_0 = arith.constant 0 : i32
    %c0_i32_1 = arith.constant 0 : i32
    return %c0_i32, %c0_i32_0 : i32, i32
  }
  func.func @transform_11(%arg0: i32) -> (i32, i32) {
    %c0_i32 = arith.constant 0 : i32
    %c0_i32_0 = arith.constant 0 : i32
    %c0_i32_1 = arith.constant 0 : i32
    return %c0_i32, %c0_i32_0 : i32, i32
  }
  func.func @transform_12(%arg0: i32) -> (i32, i32) {
    %c0_i32 = arith.constant 0 : i32
    %c0_i32_0 = arith.constant 0 : i32
    %c0_i32_1 = arith.constant 0 : i32
    return %c0_i32, %c0_i32_0 : i32, i32
  }
  func.func @transform_13(%arg0: i32) -> (i32, i32, i32) {
    %c0_i32 = arith.constant 0 : i32
    %c0_i32_0 = arith.constant 0 : i32
    %c0_i32_1 = arith.constant 0 : i32
    return %arg0, %c0_i32, %c0_i32_0 : i32, i32, i32
  }
}

</mosaic_0001>

<bundles_post_ra>
// kernel: tpu_custom_call.1
= control target key start
LH: loop header
LB: loop body
LE: loop exit
PB: predicated region body
PF: predicated region fallthrough
CT: control target
= control target key end

     0   :  { %s4108_s0 = inlined_call_operand.hbm [shape: f32[8,16,128], index: 0, kind: input, shape index: {}]   ;;  %s4109_s1 = inlined_call_operand.hbm [shape: f32[16,128], index: 1, kind: input, shape index: {}]   ;;  %s4110_s2 = inlined_call_operand.vmem [shape: f32[1,128], index: 2, kind: input, shape index: {}]   ;;  %s4111_s3 = inlined_call_operand.hbm [shape: bf16[128,256], index: 3, kind: input, shape index: {}]   ;;  %s4112_s4 = inlined_call_operand.vmem [shape: f32[1,256], index: 4, kind: input, shape index: {}]   ;;  %s4113_s5 = inlined_call_operand.vmem [shape: f32[1,128], index: 5, kind: input, shape index: {}]   ;;  %s4114_s6 = inlined_call_operand.vmem [shape: f32[1,128], index: 6, kind: input, shape index: {}]   ;;  %s4115_s7 = inlined_call_operand.hbm [shape: bf16[128,256], index: 7, kind: input, shape index: {}]   ;;  %s4116_s8 = inlined_call_operand.vmem [shape: f32[1,256], index: 8, kind: input, shape index: {}]   ;;  %s4117_s9 = inlined_call_operand.hbm [shape: bf16[256,128], index: 9, kind: input, shape index: {}]   ;;  %s4118_s10 = inlined_call_operand.vmem [shape: f32[1,128], index: 10, kind: input, shape index: {}]   ;;  %s4119_s11 = inlined_call_operand.vmem [shape: f32[1,128], index: 11, kind: input, shape index: {}]   ;;  %s4120_s12 = inlined_call_operand.vmem [shape: f32[1,128], index: 12, kind: input, shape index: {}]   ;;  %s4121_s13 = inlined_call_operand.hbm [shape: f32[8,16,128], index: 13, kind: output, shape index: {}]  }
   0x1   :  { %4143 = sst [smem:[#allocation19_spill]] %s4109_s1 }
   0x2   :  { %4144 = sst [smem:[#allocation20_spill]] %s4111_s3 }
   0x3   :  { %4145 = sst [smem:[#allocation21_spill]] %s4115_s7 }
   0x4   :  { %4146 = sst [smem:[#allocation22_spill]] %s4117_s9 }
   0x5   :  { %18 = vsyncpa [#allocation3], 0 }
   0x6   :  { %20 = vsyncpa [#allocation3 + $0x1], 0 }
   0x7   :  { %21 = vsyncpa [#allocation6], 0 }
   0x8   :  { %22 = vsyncpa [#allocation9], 0 }
   0x9   :  { %23 = vsyncpa [#allocation4], 0 }
   0xa   :  { %25 = vsyncpa [#allocation4 + $0x1], 0  ;;  %s2953_s25 = smov 0   ;;  %s2955_s26 = smov 0  }
   0xb   :  { %s2957_s27 = smov 0   ;;  %s2959_s28 = smov 0  }
   0xc LB: > { %4147 = sst [smem:[#allocation16_spill]] %s2856_s25  ;;  %s2974_s29 = sadd.s32 4294967295, %s2868_s28   ;;  %s2868_s28 = sphi %s2959_s28, %s4217_s28   ;;  %s2864_s27 = sphi %s2957_s27, %s4216_s27   ;;  %s2860_s26 = sphi %s2955_s26, %s4215_s26   ;;  %s2856_s25 = sphi %s2953_s25, %s4214_s25  }
   0xd   : > { %s2261_s30 = sadd.s32 4294967294, %s2868_s28   ;;  %p51_p0 = scmp.ne.s32.totalorder %s2860_s26, %s2856_s25 }
   0xe   : > { %p4124_p1 = scmp.eq.s32.totalorder %s2974_s29, 0  ;;  %p327_p2 = scmp.eq.s32.totalorder %s2974_s29, 1 }
   0xf   : > { %p333_p3 = scmp.eq.s32.totalorder %s2261_s30, 1  ;;  %p2262_p5 = scmp.ge.s32.totalorder %s2868_s28, 1 }
  0x10   : > { %p2983_p4 = por %p4124_p1, %p51_p0  ;;  %p340_p7 = scmp.lt.s32.totalorder %s2868_s28, 3 }
  0x11   : > { %p2988_p6 = por %p333_p3, %p51_p0  ;;  %s2870_s17 = smov [#allocation5]  }
  0x12   : > { %s4148_s14 = scalar_select %p2983_p4, 1, 0 }
  0x13   : > { %s4149_s15 = scalar_select %p2988_p6, 1, 0 }
  0x14   : > { %p2993_p8 = pnand %p2262_p5, %p340_p7  ;;  %s352_s18 = sshll.u32 %s2870_s17, 4  ;;  %s353_s18 = int_to_ptr.vmem [resolvable:$true] %s352_s18 }
  0x15   : > { %4150 = sst [smem:[#allocation17_spill]] %s4149_s15  ;;  %s2871_s20 = smov [#allocation8]  }
  0x16   : > { %s4151_s16 = scalar_select %p2993_p8, 1, 0 }
  0x17   : > { %p2443_p9 = pneg %p2993_p8  ;;  %s390_s21 = sshll.u32 %s2871_s20, 4  ;;  %s391_s21 = int_to_ptr.vmem [resolvable:$true] %s390_s21 }
  0x18   : > { %s2872_s22 = smov [#allocation7]   ;;  %s2675_s24 = scalar_lea.vmem %s353_s18, 256 }
  0x19   : > { %p3002_p11 = pnand %p2443_p9, %p4124_p1  ;;  %s368_s23 = sshll.u32 %s2872_s22, 4  ;;  %s369_s23 = int_to_ptr.vmem [resolvable:$true] %s368_s23 }
  0x1a   : > { %p2676_p13 = scmp.ne.s32.totalorder %s353_s18, %s2675_s24  ;;  %p2683_p5 = scmp.lt.s32.totalorder %s353_s18, %s353_s18 }
  0x1b   : > { %p2666_p12 = pneg %p3002_p11  ;;  %p2684_p7 = scmp.lt.s32.totalorder %s2675_s24, %s2675_s24 }
  0x1d   : > { %p2678_p0 = pnand %p2676_p13, %p2666_p12  ;;  %p2685_p9 = por %p2684_p7, %p2683_p5 }
  0x1f   : > { %p2679_p3 = pneg %p2678_p0 }
  0x21   : > { %p2686_p10 = pnand %p2685_p9, %p2679_p3 }
  0x23   : > { %2689 = shalt.err (!%p2686_p10)
}
  0x24   : > { %s4125_s30 = smov 128   ;;  %s4126_s17 = smov 8  }
  0x25   : > { %s4153_s1 = sld [smem:[#allocation19_spill]]  ;;  %s2701_s15 = scalar_lea.vmem %s391_s21, 2048 }
  0x26   : > { %p2702_p13 = scmp.ne.s32.totalorder %s391_s21, %s2701_s15  ;;  %p2709_p3 = scmp.lt.s32.totalorder %s391_s21, %s391_s21 }
  0x27   : > { %p2710_p10 = scmp.lt.s32.totalorder %s2701_s15, %s2701_s15 }
  0x28   : > { %p2704_p0 = pnand %p2702_p13, %p2666_p12 }
  0x29   : > { %p2711_p7 = por %p2710_p10, %p2709_p3 }
  0x2a   : > { %p2705_p5 = pneg %p2704_p0 }
  0x2b   : > { %2446 = dma.hbm_to_vmem [thread:$0]  (!%p3002_p11), %s4153_s1, 256, %s353_s18, [#allocation6], %s4125_s30, %s4125_s30, %s4126_s17  }
  0x2c   : > { %p2712_p9 = pnand %p2711_p7, %p2705_p5 }
  0x2e   : > { %2715 = shalt.err (!%p2712_p9)
}
  0x2f   : > { %s4154_s7 = sld [smem:[#allocation21_spill]]  ;;  %s2727_s18 = scalar_lea.vmem %s369_s23, 2048 }
  0x30   : > { %p2728_p1 = scmp.ne.s32.totalorder %s369_s23, %s2727_s18  ;;  %p2735_p3 = scmp.lt.s32.totalorder %s369_s23, %s369_s23 }
  0x31   : > { %p2736_p5 = scmp.lt.s32.totalorder %s2727_s18, %s2727_s18 }
  0x32   : > { %p2730_p13 = pnand %p2728_p1, %p2666_p12 }
  0x33   : > { %p2737_p10 = por %p2736_p5, %p2735_p3 }
  0x34   : > { %p2731_p0 = pneg %p2730_p13 }
  0x35   : > { %2452 = dma.hbm_to_vmem [thread:$0]  (!%p3002_p11), %s4154_s7, 2048, %s391_s21, [#allocation9], %s4125_s30, %s4125_s30, %s4126_s17  }
  0x36   : > { %p2738_p7 = pnand %p2737_p10, %p2731_p0 }
  0x38   : > { %2741 = shalt.err (!%p2738_p7)
}
  0x39   : > { %s4155_s3 = sld [smem:[#allocation20_spill]]  ;;  %s2875_s21 = smov [#allocation10]  }
  0x3a   : > { %s406_s20 = sshll.u32 %s2875_s21, 4  ;;  %s407_s20 = int_to_ptr.vmem [resolvable:$true] %s406_s20 }
  0x3b   : > { %s2753_s22 = scalar_lea.vmem %s407_s20, 2048  ;;  %p2761_p0 = scmp.lt.s32.totalorder %s407_s20, %s407_s20 }
  0x3c   : > { %p2754_p1 = scmp.ne.s32.totalorder %s407_s20, %s2753_s22  ;;  %p2762_p3 = scmp.lt.s32.totalorder %s2753_s22, %s2753_s22 }
  0x3e   : > { %p2756_p9 = pnand %p2754_p1, %p2666_p12  ;;  %p2763_p5 = por %p2762_p3, %p2761_p0 }
  0x3f   : > { %2449 = dma.hbm_to_vmem [thread:$0]  (!%p3002_p11), %s4155_s3, 2048, %s369_s23, [#allocation6], %s4125_s30, %s4125_s30, %s4126_s17  }
  0x40   : > { %p2757_p13 = pneg %p2756_p9 }
  0x42   : > { %p2764_p10 = pnand %p2763_p5, %p2757_p13 }
  0x44   : > { %2767 = shalt.err (!%p2764_p10)
}
  0x45   : > { %s2876_s24 = smov 64   ;;  %s2877_s23 = smov 4  }
  0x46   : > { %s4156_s9 = sld [smem:[#allocation22_spill]]  ;;  %s3050_s15 = sadd.s32 1, %s2868_s28  }
  0x47   : > { %s35_s21 = ssub.s32 %s2868_s28, %s3050_s15  ;;  %s38_s22 = sadd.s32 1, %s2864_s27 }
  0x48   : > { %p36_p12 = scmp.eq.s32.totalorder %s35_s21, 0  ;;  %p45_p7 = scmp.ne.s32.totalorder %s2864_s27, %s2860_s26 }
  0x49   : > { %p46_p1 = scmp.eq.s32.totalorder %s2868_s28, 0  ;;  %p2468_p0 = scmp.lt.s32.totalorder %s2868_s28, 2 }
  0x4a   : > { %s3059_s30 = scalar_select %p36_p12, %s2864_s27, %s38_s22  }
  0x4b   : > { %p47_p9 = por %p46_p1, %p45_p7  ;;  %p3063_p13 = por %p327_p2, %p45_p7 }
  0x4c   : > { %2455 = dma.hbm_to_vmem [thread:$0]  (!%p3002_p11), %s4156_s9, 2048, %s407_s20, [#allocation9], %s2876_s24, %s2876_s24, %s2877_s23  }
  0x4d   : > { %4157 = sst [smem:[#allocation18_spill]] %s3059_s30  ;;  %s429_s19 = sand.u32 1, %s2864_s27  }
  0x4e   : > { %s4158_s17 = scalar_select %p3063_p13, 1, 0 }
  0x4f   : > { %s2268_s18 = sshll.u32 %s429_s19, 6  ;;  %s2364_s20 = sshll.u32 %s2868_s28, 10 }
  0x50   : > { %s3073_s25 = scalar_lea.hbm %s4108_s0, %s2364_s20  ;;  %s433_s21 = scalar_lea.vmem [#allocation2], %s2268_s18 }
  0x51   : > { %s441_s22 = sshll.u32 %s433_s21, 4  ;;  %p3077_p2 = pnand %p2468_p0, %p47_p9  ;;  %s3075_s22 = int_to_ptr.vmem [resolvable:$true] %s441_s22 }
  0x52   : > { %s3081_s3 = scalar_lea.sflag [#allocation3], %s429_s19  ;;  %s2768_s7 = scalar_lea.hbm %s3073_s25, 1024 }
  0x53   : > { %p2769_p11 = scmp.ne.s32.totalorder %s3073_s25, %s2768_s7  ;;  %p2770_p3 = pneg %p3077_p2 }
  0x54   : > { %s2773_s18 = scalar_lea.hbm %s4108_s0, 2048  ;;  %p2774_p12 = scmp.lt.s32.totalorder %s3073_s25, %s4108_s0 }
  0x55   : > { %p2771_p5 = pnand %p2770_p3, %p2769_p11  ;;  %p2775_p7 = scmp.lt.s32.totalorder %s2773_s18, %s2768_s7 }
  0x57   : > { %p2772_p10 = pneg %p2771_p5  ;;  %p2776_p1 = por %p2775_p7, %p2774_p12 }
  0x59   : > { %p2777_p9 = pnand %p2776_p1, %p2772_p10 }
  0x5b   : > { %2780 = shalt.err (!%p2777_p9)
}
  0x5c   : > { %s2781_s19 = scalar_lea.vmem %s3075_s22, 1024  ;;  %s2878_s9 = smov [#allocation2]  }
  0x5d   : > { %p2782_p0 = scmp.ne.s32.totalorder %s3075_s22, %s2781_s19  ;;  %s2786_s30 = sshll.u32 %s2878_s9, 4  ;;  %s2787_s30 = int_to_ptr.vmem [resolvable:$false] %s2786_s30 }
  0x5e   : > { %s2788_s20 = scalar_lea.vmem %s2787_s30, 2048  ;;  %p2789_p5 = scmp.lt.s32.totalorder %s3075_s22, %s2787_s30 }
  0x5f   : > { %p2784_p6 = pnand %p2782_p0, %p2770_p3  ;;  %p2790_p13 = scmp.lt.s32.totalorder %s2788_s20, %s2781_s19 }
  0x61   : > { %p2785_p11 = pneg %p2784_p6  ;;  %p2791_p4 = por %p2790_p13, %p2789_p5 }
  0x63   : > { %p2792_p8 = pnand %p2791_p4, %p2785_p11 }
  0x65   : > { %2795 = shalt.err (!%p2792_p8)
}
  0x66   : > { %s4160_s7 = smov 8   ;;  %s4161_s24 = smov 128  }
  0x67   : > { %2459 = dma.hbm_to_vmem [thread:$0]  (!%p3077_p2), %s3073_s25, 1024, %s3075_s22, %s3081_s3, %s4161_s24, %s4161_s24, %s4160_s7  }
  0x68   : > { %p4162_p6 = scmp.ne.s32.totalorder %s4151_s16, 0 }
  0x69   : > { %s3108_s9 = sand.u32 (!%p4162_p6), 1, %s2860_s26   ;;  %p4163_p4 = scmp.ne.s32.totalorder (!%p4162_p6), %s4148_s14, 0 }
  0x6a   : > { %453 = sbr.rel (%p4162_p6) target bundleno = 1561 (0x619), region = 72  ;;  %s2273_s30 = sshll.u32 (!%p4162_p6), %s3108_s9, 6 }
  0x6b   : > { %s456_s18 = scalar_lea.sflag (!%p4162_p6), [#allocation3], %s3108_s9  ;;  %s3114_s1 = scalar_lea.vmem (!%p4162_p6), [#allocation2], %s2273_s30 }
  0x6f   : > { %2839 = dma.done.wait (%p4163_p4), %s456_s18, 1024  }
  0x70   : > { %2841 = vsyncadd (%p4163_p4), %s456_s18, 4294966272  ;;  %p4164_p8 = scmp.eq.s32.totalorder %s2974_s29, 0 }
  0x72   : > { %2843 = dma.done.wait (%p4164_p8), [#allocation6], 2304   ;;  %p4165_p13 = pmov %p4164_p8 }
  0x73   : > { %p4166_p2 = pmov %p4164_p8 }
  0x74   : > { %2845 = vsyncadd (%p4165_p13), [#allocation6], 4294964992 }
  0x75   : > { %2847 = dma.done.wait (%p4166_p2), [#allocation9], 4096   ;;  %p4167_p3 = pmov %p4166_p2 }
  0x76   : > { %v2879_v0 = vmov 0   ;;  %v2517_v1 = vld [vmem:[#allocation7 + $0x74] ss:$8 sps:$4 sm:$0xff]   ;;  %v529_v2 = vlaneseq  ;;  %v2519_v3 = vld [vmem:[#allocation7 + $0x70] ss:$8 sps:$4 sm:$0xff]   ;;  %v3150_v14 = vld [vmem:[%s3114_s1 + $0x38] sm:$0xff] }
  0x77   : > { %2849 = vsyncadd (%p4167_p3), [#allocation9], 4294963200  ;;  %1368 = vmatprep.mubr.bf16.mxu0 %v2879_v0  ;;  %1736 = vmatprep.mubr.bf16.mxu1 %v2879_v0  ;;  %v2520_v4 = vld [vmem:[#allocation7 + $0x64] ss:$8 sps:$4 sm:$0xff]   ;;  %v2522_v5 = vld [vmem:[#allocation7 + $0x60] ss:$8 sps:$4 sm:$0xff]  }
  0x78   : > { %1336 = vmatprep.subr.bf16.mxu0 %v2517_v1  ;;  %v2523_v6 = vld [vmem:[#allocation7 + $0x54] ss:$8 sps:$4 sm:$0xff]   ;;  %v3130_v7 = vshrl.u32 %v529_v2, 7  ;;  %v2525_v8 = vld [vmem:[#allocation7 + $0x50] ss:$8 sps:$4 sm:$0xff]   ;;  %v552_v22 = vrot.slane %v3150_v14, 7 }
  0x79   : > { %1337 = vmatpush1.bf16.msra.mxu0 %v2519_v3  ;;  %v2526_v9 = vld [vmem:[#allocation7 + $0x44] ss:$8 sps:$4 sm:$0xff]   ;;  %v2528_v11 = vld [vmem:[#allocation7 + $0x40] ss:$8 sps:$4 sm:$0xff]   ;;  %v3141_v12 = vld [vmem:[%s3114_s1] sm:$0xff]  ;;  %v600_v25 = vrot.slane %v3150_v14, 6 }
  0x7a   : > { %1338 = vmatprep.subr.bf16.mxu0 %v2520_v4  ;;  %v3133_v10 = vadd.s32 8, %v3130_v7  ;;  %vm4135_vm0 = vcmp.lt.s32.totalorder %v3130_v7, 1  ;;  %vm563_vm1 = vcmp.ge.s32.totalorder %v3130_v7, 1  ;;  %vm4137_vm2 = vcmp.lt.s32.totalorder %v3130_v7, 2  ;;  %v3147_v13 = vld [vmem:[%s3114_s1 + $0x8] sm:$0xff]  ;;  %s4030_s25 = scalar_lea.vmem [#allocation11], %s2273_s30 }
  0x7b   : > { %vm4131_vm3 = vcmp.ge.s32.totalorder %v3130_v7, 2  ;;  %vm4132_vm4 = vcmp.lt.s32.totalorder %v3130_v7, 3  ;;  %vm4130_vm5 = vcmp.ge.s32.totalorder %v3130_v7, 3  ;;  %vm4134_vm6 = vcmp.lt.s32.totalorder %v3130_v7, 4  ;;  %v3152_v15 = vld [vmem:[#allocation5] ss:$0 sm:$0xff] }
  0x7c   : > { %vm4133_vm7 = vcmp.lt.s32.totalorder %v3130_v7, 5  ;;  %v545_v16 = vrot.slane %v3141_v12, 7  ;;  %v593_v17 = vrot.slane %v3141_v12, 6  ;;  %v2529_v18 = vld [vmem:[#allocation7 + $0x34] ss:$8 sps:$4 sm:$0xff]   ;;  %v537_v19 = vmul.f32 %v3152_v15, %v3141_v12  ;;  %s2366_s30 = sshll.u32 %s2974_s29, 10 }
  0x7d   : > { %1339 = vmatpush1.bf16.msra.mxu0 %v2522_v5  ;;  %v538_v20 = vmul.f32 %v3152_v15, %v3147_v13  ;;  %v546_v21 = vrot.slane %v3147_v13, 7  ;;  %v3162_v23 = vld [vmem:[#allocation5 + $0x1] ss:$0 sm:$0xff]  ;;  %vm707_vm8 = vcmp.ge.s32.totalorder %v3130_v7, 4  ;;  %v594_v24 = vrot.slane %v3147_v13, 6  ;;  %s2150_s22 = sshll.u32 %s4030_s25, 4  ;;  %s4061_s19 = scalar_lea.hbm %s4121_s13, %s2366_s30  ;;  %s4063_s22 = int_to_ptr.vmem [resolvable:$true] %s2150_s22 }
  0x7e   : > { %1340 = vmatprep.subr.bf16.mxu0 %v2523_v6  ;;  %v3167_v26 = vld [vmem:[#allocation5 + $0x2] ss:$0 sm:$0xff]  ;;  %v641_v27 = vrot.slane %v3141_v12, 5  ;;  %v642_v28 = vrot.slane %v3147_v13, 5  ;;  %v3179_v30 = vsel %vm4135_vm0, %v552_v22, %v545_v16  ;;  %v648_v31 = vrot.slane %v3150_v14, 5  ;;  %s2136_s20 = scalar_lea.sflag [#allocation4], %s3108_s9 }
  0x7f   : > { %v560_v29 = vsel %vm4135_vm0, %v545_v16, %v546_v21  ;;  %v3182_v32 = vld [vmem:[#allocation5 + $0x3] ss:$0 sm:$0xff]  ;;  %v689_v33 = vrot.slane %v3141_v12, 4  ;;  %vm755_vm9 = vcmp.ge.s32.totalorder %v3130_v7, 5  ;;  %vm793_vm10 = vcmp.lt.s32.totalorder %v3130_v7, 6  ;;  %s2796_s7 = scalar_lea.vmem %s4063_s22, 1024 }
  0x80   : > { %v2531_v34 = vld [vmem:[#allocation7 + $0x30] ss:$8 sps:$4 sm:$0xff]   ;;  %v569_v35 = vmul.f32 %v3162_v23, %v3179_v30  ;;  %v570_v36 = vmul.f32 %v3162_v23, %v560_v29  ;;  %v608_v37 = vsel %vm4137_vm2, %v593_v17, %v594_v24  ;;  %v3198_v38 = vsel %vm4137_vm2, %v600_v25, %v593_v17  ;;  %v2532_v39 = vld [vmem:[#allocation7 + $0x24] ss:$8 sps:$4 sm:$0xff]   ;;  %v2534_v44 = vld [vmem:[#allocation7 + $0x20] ss:$8 sps:$4 sm:$0xff]   ;;  %p2797_p10 = scmp.ne.s32.totalorder %s4063_s22, %s2796_s7 }
  0x81   : > { %1341 = vmatpush1.bf16.msra.mxu0 %v2525_v8  ;;  %vm841_vm11 = vcmp.lt.s32.totalorder %v3130_v7, 7  ;;  %v617_v40 = vmul.f32 %v3167_v26, %v3198_v38  ;;  %v618_v41 = vmul.f32 %v3167_v26, %v608_v37  ;;  %v656_v42 = vsel %vm4132_vm4, %v641_v27, %v642_v28  ;;  %v3223_v53 = vld [vmem:[#allocation5 + $0x4] ss:$0 sm:$0xff]  ;;  %v3230_v58 = vld [vmem:[#allocation5 + $0x5] ss:$0 sm:$0xff]  ;;  %p4208_p12 = scmp.ne.s32.totalorder %s4158_s17, 0 }
  0x82   : > { %1342 = vmatprep.subr.bf16.mxu0 %v2526_v9  ;;  %v3212_v43 = vsel %vm4132_vm4, %v648_v31, %v641_v27  ;;  %v577_v45 = vsel %vm563_vm1, %v569_v35, 0.0  ;;  %v586_v46 = vadd.f32 %v570_v36, %v538_v20  ;;  %v666_v48 = vmul.f32 %v3182_v32, %v656_v42  ;;  %v2535_v59 = vld [vmem:[#allocation7 + $0x14] ss:$8 sps:$4 sm:$0xff]   ;;  %v2537_v1 = vld [vmem:[#allocation7 + $0x10] ss:$8 sps:$4 sm:$0xff]   ;;  %s2880_s29 = smov [#allocation11]  }
  0x83   : > { %v665_v47 = vmul.f32 %v3182_v32, %v3212_v43  ;;  %v585_v49 = vadd.f32 %v577_v45, %v537_v19  ;;  %v625_v50 = vsel %vm4131_vm3, %v617_v40, 0.0  ;;  %v690_v51 = vrot.slane %v3147_v13, 4  ;;  %v3253_v6 = vld [vmem:[#allocation5 + $0x6] ss:$0 sm:$0xff]  ;;  %v2538_v8 = vld [vmem:[#allocation7 + $0x4] ss:$8 sps:$4 sm:$0xff]   ;;  %p2798_p7 = pnand %p2797_p10, %p4208_p12 }
  0x84   : > { %v4141_v52 = vrot.slane %v3150_v14, 4  ;;  %vm803_vm12 = vcmp.ge.s32.totalorder %v3130_v7, 6  ;;  %v634_v54 = vadd.f32 %v618_v41, %v586_v46  ;;  %v737_v56 = vrot.slane %v3141_v12, 3  ;;  %v3263_v19 = vld [vmem:[#allocation5 + $0x8] ss:$0 sm:$0xff]  ;;  %s2800_s24 = sshll.u32 %s2880_s29, 4  ;;  %s2801_s24 = int_to_ptr.vmem [resolvable:$false] %s2800_s24 }
  0x85   : > { %1343 = vmatpush1.bf16.msra.mxu0 %v2528_v11  ;;  %v673_v55 = vsel %vm4130_vm5, %v665_v47, 0.0  ;;  %v738_v57 = vrot.slane %v3147_v13, 3  ;;  %vm851_vm13 = vcmp.ge.s32.totalorder %v3130_v7, 7  ;;  %vm914_vm14 = vcmp.ge.s32.totalorder %v3133_v10, 9  ;;  %v3271_v35 = vld [vmem:[#allocation5 + $0xa] ss:$0 sm:$0xff]  ;;  %p2799_p1 = pneg %p2798_p7  ;;  %p2803_p9 = scmp.lt.s32.totalorder %s4063_s22, %s2801_s24 }
  0x86   : > { %1344 = vmatprep.subr.bf16.mxu0 %v2529_v18  ;;  %v633_v60 = vadd.f32 %v625_v50, %v585_v49  ;;  %v704_v61 = vsel %vm4134_vm6, %v689_v33, %v690_v51  ;;  %v705_v62 = vsel %vm4134_vm6, %v4141_v52, %v689_v33  ;;  %v4140_v63 = vrot.slane %v3150_v14, 3  ;;  %v3261_v18 = vld [vmem:[#allocation5 + $0x7] ss:$0 sm:$0xff]  ;;  %v3278_v41 = vld [vmem:[#allocation5 + $0xb] ss:$0 sm:$0xff]  ;;  %s2802_s18 = scalar_lea.vmem %s2801_s24, 2048 }
  0x87   : > { %vm945_vm15 = vcmp.ge.s32.totalorder %v3133_v10, 10  ;;  %vm976_vm5 = vcmp.ge.s32.totalorder %v3133_v10, 11  ;;  %vm1007_vm3 = vcmp.ge.s32.totalorder %v3133_v10, 12  ;;  %vm1038_vm4 = vcmp.ge.s32.totalorder %v3133_v10, 13  ;;  %v3280_v42 = vld [vmem:[#allocation5 + $0xc] ss:$0 sm:$0xff]  ;;  %p2804_p0 = scmp.lt.s32.totalorder %s2802_s18, %s2796_s7 }
  0x88   : > { %v682_v2 = vadd.f32 %v666_v48, %v634_v54  ;;  %v713_v3 = vmul.f32 %v3223_v53, %v705_v62  ;;  %v714_v4 = vmul.f32 %v3223_v53, %v704_v61  ;;  %v752_v5 = vsel %vm4133_vm7, %v737_v56, %v738_v57  ;;  %v2540_v45 = vld [vmem:[#allocation7] ss:$8 sps:$4 sm:$0xff]  }
  0x89   : > { %1345 = vmatpush1.bf16.msra.mxu0 %v2531_v34  ;;  %v681_v9 = vadd.f32 %v673_v55, %v633_v60  ;;  %v753_v11 = vsel %vm4133_vm7, %v4140_v63, %v737_v56  ;;  %v762_v16 = vmul.f32 %v3230_v58, %v752_v5  ;;  %v785_v17 = vrot.slane %v3141_v12, 2  ;;  %v3269_v34 = vld [vmem:[#allocation5 + $0x9] ss:$0 sm:$0xff]  ;;  %p2805_p11 = por %p2804_p0, %p2803_p9 }
  0x8a   : > { %1346 = vmatprep.subr.bf16.mxu0 %v2532_v39  ;;  %v721_v20 = vsel %vm707_vm8, %v713_v3, 0.0  ;;  %v730_v27 = vadd.f32 %v714_v4, %v682_v2  ;;  %v761_v29 = vmul.f32 %v3230_v58, %v753_v11  ;;  %v786_v33 = vrot.slane %v3147_v13, 2  ;;  %v3308_v3 = vld [vmem:[#allocation5 + $0xe] ss:$0 sm:$0xff]  ;;  %v3310_v4 = vld [vmem:[#allocation5 + $0xf] ss:$0 sm:$0xff] }
  0x8b   : > { %vm4142_vm7 = vcmp.ge.s32.totalorder %v3133_v10, 14  ;;  %vm4138_vm6 = vcmp.ge.s32.totalorder %v3133_v10, 15  ;;  %v729_v36 = vadd.f32 %v721_v20, %v681_v9  ;;  %v4139_v37 = vrot.slane %v3150_v14, 2  ;;  %p2806_p5 = pnand %p2805_p11, %p2799_p1 }
  0x8c   : > { %v833_v39 = vrot.slane %v3141_v12, 1  ;;  %v834_v40 = vrot.slane %v3147_v13, 1  ;;  %v769_v46 = vsel %vm755_vm9, %v761_v29, 0.0  ;;  %v778_v47 = vadd.f32 %v762_v16, %v730_v27 }
  0x8d   : > { %1347 = vmatpush1.bf16.msra.mxu0 %v2534_v44  ;;  %v3282_v44 = vld [vmem:[#allocation5 + $0xd] ss:$0 sm:$0xff]  ;;  %v800_v48 = vsel %vm793_vm10, %v785_v17, %v786_v33  ;;  %v4136_v49 = vrot.slane %v3150_v14, 1  ;;  %v777_v50 = vadd.f32 %v769_v46, %v729_v36  ;;  %v801_v54 = vsel %vm793_vm10, %v4139_v37, %v785_v17  ;;  %v3320_v17 = vld [vmem:[%s4110_s2] ss:$0 sm:$0xff]  ;;  %v3329_v36 = vld [vmem:[%s3114_s1 + $0x10] sm:$0xff] }
  0x8e   : > { %1348 = vmatprep.subr.bf16.mxu0 %v2535_v59  ;;  %v810_v55 = vmul.f32 %v3253_v6, %v800_v48  ;;  %v848_v56 = vsel %vm841_vm11, %v833_v39, %v834_v40  ;;  %v809_v59 = vmul.f32 %v3253_v6, %v801_v54  ;;  %v889_v2 = vmul.f32 %v3263_v19, %v3141_v12 }
  0x8f   : > { %v849_v60 = vsel %vm841_vm11, %v4136_v49, %v833_v39  ;;  %v858_v61 = vmul.f32 %v3261_v18, %v848_v56  ;;  %v920_v9 = vmul.f32 %v3269_v34, %v3179_v30  ;;  %v951_v16 = vmul.f32 %v3271_v35, %v3198_v38 }
  0x90   : > { %v857_v5 = vmul.f32 %v3261_v18, %v849_v60  ;;  %v817_v20 = vsel %vm803_vm12, %v809_v59, 0.0  ;;  %v1013_v27 = vmul.f32 %v3280_v42, %v705_v62  ;;  %v1044_v29 = vmul.f32 %v3282_v44, %v753_v11 }
  0x91   : > { %1349 = vmatpush1.bf16.msra.mxu0 %v2537_v1  ;;  %v826_v1 = vadd.f32 %v810_v55, %v778_v47  ;;  %v825_v30 = vadd.f32 %v817_v20, %v777_v50  ;;  %v928_v46 = vsel %vm914_vm14, %v920_v9, 0.0  ;;  %v3336_v47 = vld [vmem:[%s3114_s1 + $0x18] sm:$0xff]  ;;  %v1075_v56 = vmul.f32 %v3308_v3, %v801_v54 }
  0x92   : > { %1350 = vmatprep.subr.bf16.mxu0 %v2538_v8  ;;  %v982_v8 = vmul.f32 %v3278_v41, %v3212_v43  ;;  %v865_v38 = vsel %vm851_vm13, %v857_v5, 0.0  ;;  %v959_v43 = vsel %vm945_vm15, %v951_v16, 0.0  ;;  %v1021_v11 = vsel %vm1007_vm3, %v1013_v27, 0.0 }
  0x93   : > { %v874_v39 = vadd.f32 %v858_v61, %v826_v1  ;;  %v1052_v48 = vsel %vm1038_vm4, %v1044_v29, 0.0  ;;  %v873_v50 = vadd.f32 %v865_v38, %v825_v30  ;;  %v1106_v59 = vmul.f32 %v3310_v4, %v849_v60 }
  0x94   : > { %v990_v62 = vsel %vm976_vm5, %v982_v8, 0.0  ;;  %v1137_v61 = vmul.f32 %v3320_v17, %v3147_v13  ;;  %v539_v1 = vmul.f32 %v3152_v15, %v3329_v36  ;;  %v540_v5 = vmul.f32 %v3152_v15, %v3336_v47 }
  0x95   : > { %1351 = vmatpush1.bf16.msra.mxu0 %v2540_v45  ;;  %v905_v55 = vadd.f32 %v889_v2, %v874_v39  ;;  %v1136_v45 = vmul.f32 %v3320_v17, %v3141_v12  ;;  %v1083_v2 = vsel %vm4142_vm7, %v1075_v56, 0.0  ;;  %v1114_v54 = vsel %vm4138_vm6, %v1106_v59, 0.0 }
  0x96   : > { %v547_v60 = vrot.slane %v3329_v36, 7  ;;  %v548_v12 = vrot.slane %v3336_v47, 7  ;;  %v595_v20 = vrot.slane %v3329_v36, 6  ;;  %v596_v8 = vrot.slane %v3336_v47, 6 }
  0x97   : > { %v936_v9 = vadd.f32 %v928_v46, %v905_v55  ;;  %v3361_v16 = vadd.f32 %v1136_v45, %v873_v50  ;;  %v643_v30 = vrot.slane %v3329_v36, 5  ;;  %v644_v38 = vrot.slane %v3336_v47, 5 }
  0x98   : > { %v3370_v29 = vsel %vm4135_vm0, %v546_v21, %v547_v60  ;;  %v558_v46 = vsel %vm4135_vm0, %v547_v60, %v548_v12  ;;  %v606_v21 = vsel %vm4137_vm2, %v595_v20, %v596_v8  ;;  %v607_v56 = vsel %vm4137_vm2, %v594_v24, %v595_v20 }
  0x99   : > { %v967_v27 = vadd.f32 %v959_v43, %v936_v9  ;;  %v1152_v39 = vmul.f32 %v3361_v16, %v3361_v16  ;;  %v571_v43 = vmul.f32 %v3162_v23, %v3370_v29  ;;  %v572_v55 = vmul.f32 %v3162_v23, %v558_v46 }
  0x9a   : > { %v620_v59 = vmul.f32 %v3167_v26, %v606_v21  ;;  %v619_v60 = vmul.f32 %v3167_v26, %v607_v56  ;;  %vm4168_vm0 = vcmp.lt.s32.totalorder %v3130_v7, 3  ;;  %vm4170_vm6 = vcmp.ge.s32.totalorder %v3130_v7, 2 }
  0x9b   : > { %v998_v50 = vadd.f32 %v990_v62, %v967_v27  ;;  %v1160_v45 = vmul.f32 %v1152_v39, %v3361_v16  ;;  %v579_v9 = vsel %vm563_vm1, %v571_v43, 0.0  ;;  %v654_v62 = vsel %vm4168_vm0, %v643_v30, %v644_v38  ;;  %vm4169_vm2 = vmmov %vm4168_vm0 }
  0x9c   : > { %v587_v46 = vadd.f32 %v579_v9, %v539_v1  ;;  %v588_v49 = vadd.f32 %v572_v55, %v540_v5  ;;  %v655_v24 = vsel %vm4169_vm2, %v642_v28, %v643_v30  ;;  %v627_v39 = vsel %vm4170_vm6, %v619_v60, 0.0 }
  0x9d   : > { %v1029_v27 = vadd.f32 %v1021_v11, %v998_v50  ;;  %v1168_v20 = vmul.f32 0.044715, %v1160_v45  ;;  %v667_v43 = vmul.f32 %v3182_v32, %v655_v24  ;;  %v668_v21 = vmul.f32 %v3182_v32, %v654_v62 }
  0x9e   : > { %v635_v63 = vadd.f32 %v627_v39, %v587_v46  ;;  %v636_v52 = vadd.f32 %v620_v59, %v588_v49  ;;  %v691_v11 = vrot.slane %v3329_v36, 4  ;;  %vm4171_vm0 = vcmp.ge.s32.totalorder %v3130_v7, 3 }
  0x9f   : > { %v1060_v37 = vadd.f32 %v1052_v48, %v1029_v27  ;;  %v1176_v1 = vadd.f32 %v1168_v20, %v3361_v16  ;;  %v675_v5 = vsel %vm4171_vm0, %v667_v43, 0.0  ;;  %v692_v28 = vrot.slane %v3336_v47, 4 }
  0xa0   : > { %v739_v30 = vrot.slane %v3329_v36, 3  ;;  %v683_v55 = vadd.f32 %v675_v5, %v635_v63  ;;  %v684_v45 = vadd.f32 %v668_v21, %v636_v52  ;;  %vm4172_vm2 = vcmp.lt.s32.totalorder %v3130_v7, 4 }
  0xa1   : > { %v1091_v50 = vadd.f32 %v1083_v2, %v1060_v37  ;;  %v703_v48 = vsel %vm4172_vm2, %v690_v51, %v691_v11  ;;  %v1184_v49 = vmul.f32 0.7978846, %v1176_v1  ;;  %vm4173_vm6 = vmmov %vm4172_vm2  ;;  %v740_v60 = vrot.slane %v3336_v47, 3 }
  0xa2   : > { %v702_v59 = vsel %vm4173_vm6, %v691_v11, %v692_v28  ;;  %v715_v9 = vmul.f32 %v3223_v53, %v703_v48  ;;  %vm4174_vm0 = vcmp.lt.s32.totalorder %v3130_v7, 5  ;;  %v787_v51 = vrot.slane %v3329_v36, 2 }
  0xa3   : > { %v1122_v62 = vadd.f32 %v1114_v54, %v1091_v50  ;;  %v716_v37 = vmul.f32 %v3223_v53, %v702_v59  ;;  %v751_v52 = vsel %vm4174_vm0, %v738_v57, %v739_v30  ;;  %2581 = vtanh.f32 %v1184_v49  ;;  %vm4175_vm2 = vmmov %vm4174_vm0 }
  0xa4   : > { %v723_v63 = vsel %vm707_vm8, %v715_v9, 0.0  ;;  %v750_v2 = vsel %vm4175_vm2, %v739_v30, %v740_v60  ;;  %v763_v54 = vmul.f32 %v3230_v58, %v751_v52  ;;  %v788_v43 = vrot.slane %v3336_v47, 2 }
  0xa5   : > { %v3437_v27 = vadd.f32 %v1137_v61, %v1122_v62  ;;  %v731_v46 = vadd.f32 %v723_v63, %v683_v55  ;;  %v732_v20 = vadd.f32 %v716_v37, %v684_v45  ;;  %v764_v39 = vmul.f32 %v3230_v58, %v750_v2 }
  0xa6   : > { %v771_v57 = vsel %vm755_vm9, %v763_v54, 0.0  ;;  %v799_v21 = vsel %vm793_vm10, %v786_v33, %v787_v51  ;;  %v835_v11 = vrot.slane %v3329_v36, 1  ;;  %v798_v50 = vsel %vm793_vm10, %v787_v51, %v788_v43 }
  0xa7   : > { %v1153_v61 = vmul.f32 %v3437_v27, %v3437_v27  ;;  %v779_v1 = vadd.f32 %v771_v57, %v731_v46  ;;  %v780_v5 = vadd.f32 %v764_v39, %v732_v20  ;;  %v811_v30 = vmul.f32 %v3253_v6, %v799_v21 }
  0xa8   : > { %v836_v55 = vrot.slane %v3336_v47, 1  ;;  %v847_v33 = vsel %vm841_vm11, %v834_v40, %v835_v11  ;;  %v891_v45 = vmul.f32 %v3263_v19, %v3329_v36  ;;  %v812_v59 = vmul.f32 %v3253_v6, %v798_v50 }
  0xa9   : > { %v1161_v49 = vmul.f32 %v1153_v61, %v3437_v27  ;;  %v819_v9 = vsel %vm803_vm12, %v811_v30, 0.0  ;;  %v859_v62 = vmul.f32 %v3261_v18, %v847_v33  ;;  %v922_v40 = vmul.f32 %v3269_v34, %v3370_v29 }
  0xaa   : > { %v827_v37 = vadd.f32 %v819_v9, %v779_v1  ;;  %v846_v13 = vsel %vm841_vm11, %v835_v11, %v836_v55  ;;  %v953_v51 = vmul.f32 %v3271_v35, %v607_v56  ;;  %v828_v2 = vadd.f32 %v812_v59, %v780_v5 }
  0xab   : > { %v1169_v63 = vmul.f32 0.044715, %v1161_v49  ;;  %v860_v54 = vmul.f32 %v3261_v18, %v846_v13  ;;  %v867_v46 = vsel %vm851_vm13, %v859_v62, 0.0  ;;  %v930_v39 = vsel %vm914_vm14, %v922_v40, 0.0  ;;  %v3496_v62 = vld [vmem:[%s3114_s1 + $0x20] sm:$0xff] }
  0xac   : > { %v875_v20 = vadd.f32 %v867_v46, %v827_v37  ;;  %v961_v57 = vsel %vm945_vm15, %v953_v51, 0.0  ;;  %v984_v29 = vmul.f32 %v3278_v41, %v655_v24  ;;  %v1015_v61 = vmul.f32 %v3280_v42, %v703_v48 }
  0xad   : > { %v1177_v56 = vadd.f32 %v1169_v63, %v3437_v27  ;;  %v876_v11 = vadd.f32 %v860_v54, %v828_v2  ;;  %v1046_v1 = vmul.f32 %v3282_v44, %v751_v52  ;;  %v1077_v30 = vmul.f32 %v3308_v3, %v799_v21  ;;  %v3499_v52 = vld [vmem:[%s3114_s1 + $0x28] sm:$0xff] }
  0xae   : > { %v992_v5 = vsel %vm976_vm5, %v984_v29, 0.0  ;;  %v1108_v50 = vmul.f32 %v3310_v4, %v847_v33  ;;  %v1138_v49 = vmul.f32 %v3320_v17, %v3329_v36  ;;  %v1023_v24 = vsel %vm1007_vm3, %v1015_v61, 0.0 }
  0xaf   : > { %v1185_v59 = vmul.f32 0.7978846, %v1177_v56  ;;  %v907_v9 = vadd.f32 %v891_v45, %v876_v11  ;;  %v1054_v48 = vsel %vm1038_vm4, %v1046_v1, 0.0  ;;  %v1085_v21 = vsel %vm4142_vm7, %v1077_v30, 0.0 }
  0xb0   : > { %vm4176_vm6 = vcmp.ge.s32.totalorder %v3133_v10, 15  ;;  %v1139_v37 = vmul.f32 %v3320_v17, %v3336_v47  ;;  %v3507_v45 = vadd.f32 %v1138_v49, %v875_v20  ;;  %v2582_v13 = vpop.eup %2581  ;;  %v541_v51 = vmul.f32 %v3152_v15, %v3496_v62 }
  0xb1   : > { %v1116_v33 = vsel %vm4176_vm6, %v1108_v50, 0.0  ;;  %2583 = vtanh.f32 %v1185_v59  ;;  %v938_v40 = vadd.f32 %v930_v39, %v907_v9  ;;  %v542_v63 = vmul.f32 %v3152_v15, %v3499_v52 }
  0xb2   : > { %v1200_v2 = vadd.f32 1.0, %v2582_v13  ;;  %v1154_v54 = vmul.f32 %v3507_v45, %v3507_v45  ;;  %v549_v46 = vrot.slane %v3496_v62, 7  ;;  %v550_v29 = vrot.slane %v3499_v52, 7 }
  0xb3   : > { %v969_v56 = vadd.f32 %v961_v57, %v938_v40  ;;  %v597_v20 = vrot.slane %v3496_v62, 6  ;;  %v598_v11 = vrot.slane %v3499_v52, 6  ;;  %v645_v39 = vrot.slane %v3496_v62, 5 }
  0xb4   : > { %v1208_v61 = vmul.f32 0.5, %v1200_v2  ;;  %v1162_v1 = vmul.f32 %v1154_v54, %v3507_v45  ;;  %vm4177_vm0 = vcmp.lt.s32.totalorder %v3130_v7, 1  ;;  %vm4179_vm6 = vcmp.lt.s32.totalorder %v3130_v7, 2 }
  0xb5   : > { %v556_v30 = vsel %vm4177_vm0, %v549_v46, %v550_v29  ;;  %vm4178_vm2 = vmmov %vm4177_vm0  ;;  %v1000_v57 = vadd.f32 %v992_v5, %v969_v56  ;;  %v604_v9 = vsel %vm4179_vm6, %v597_v20, %v598_v11 }
  0xb6   : > { %v3529_v50 = vsel %vm4178_vm2, %v548_v12, %v549_v46  ;;  %v574_v59 = vmul.f32 %v3162_v23, %v556_v30  ;;  %v3539_v13 = vmul.f32 %v1208_v61, %v3361_v16  ;;  %v1170_v40 = vmul.f32 0.044715, %v1162_v1  ;;  %vm4180_vm0 = vmmov %vm4179_vm6 }
  0xb7   : > { %v573_v49 = vmul.f32 %v3162_v23, %v3529_v50  ;;  %v3545_v12 = vsel %vm4180_vm0, %v596_v8, %v597_v20  ;;  %v622_v5 = vmul.f32 %v3167_v26, %v604_v9  ;;  %v1031_v2 = vadd.f32 %v1023_v24, %v1000_v57 }
  0xb8   : > { %v590_v46 = vadd.f32 %v574_v59, %v542_v63  ;;  %v621_v56 = vmul.f32 %v3167_v26, %v3545_v12  ;;  %v1178_v16 = vadd.f32 %v1170_v40, %v3507_v45  ;;  %v646_v1 = vrot.slane %v3499_v52, 5 }
  0xb9   : > { %v581_v54 = vsel %vm563_vm1, %v573_v49, 0.0  ;;  %vm4181_vm2 = vcmp.lt.s32.totalorder %v3130_v7, 3  ;;  %v1062_v20 = vadd.f32 %v1054_v48, %v1031_v2  ;;  %vm4182_vm6 = vcmp.ge.s32.totalorder %v3130_v7, 2 }
  0xba   : > { %v589_v61 = vadd.f32 %v581_v54, %v541_v51  ;;  %v3558_v8 = vsel %vm4181_vm2, %v644_v38, %v645_v39  ;;  %v629_v24 = vsel %vm4182_vm6, %v621_v56, 0.0  ;;  %v638_v30 = vadd.f32 %v622_v5, %v590_v46  ;;  %vm4183_vm0 = vmmov %vm4181_vm2 }
  0xbb   : > { %v669_v63 = vmul.f32 %v3182_v32, %v3558_v8  ;;  %v1186_v57 = vmul.f32 0.7978846, %v1178_v16  ;;  %v652_v51 = vsel %vm4183_vm0, %v645_v39, %v646_v1  ;;  %v693_v59 = vrot.slane %v3496_v62, 4 }
  0xbc   : > { %v637_v49 = vadd.f32 %v629_v24, %v589_v61  ;;  %v1093_v9 = vadd.f32 %v1085_v21, %v1062_v20  ;;  %v670_v38 = vmul.f32 %v3182_v32, %v652_v51  ;;  %vm4184_vm2 = vcmp.ge.s32.totalorder %v3130_v7, 3 }
  0xbd   : > { %v677_v48 = vsel %vm4184_vm2, %v669_v63, 0.0  ;;  %v694_v40 = vrot.slane %v3499_v52, 4  ;;  %2585 = vtanh.f32 %v1186_v57  ;;  %vm4185_vm6 = vcmp.lt.s32.totalorder %v3130_v7, 4 }
  0xbe   : > { %v685_v5 = vadd.f32 %v677_v48, %v637_v49  ;;  %v701_v2 = vsel %vm4185_vm6, %v692_v28, %v693_v59  ;;  %v741_v54 = vrot.slane %v3496_v62, 3  ;;  %v1124_v39 = vadd.f32 %v1116_v33, %v1093_v9  ;;  %vm4186_vm0 = vmmov %vm4185_vm6  ;;  %v2584_v16 = vpop.eup %2583 }
  0xbf   : > { %v686_v46 = vadd.f32 %v670_v38, %v638_v30  ;;  %v700_v21 = vsel %vm4186_vm0, %v693_v59, %v694_v40  ;;  %v717_v56 = vmul.f32 %v3223_v53, %v701_v2  ;;  %v742_v20 = vrot.slane %v3499_v52, 3 }
  0xc0   : > { %v718_v61 = vmul.f32 %v3223_v53, %v700_v21  ;;  %vm4187_vm2 = vcmp.lt.s32.totalorder %v3130_v7, 5  ;;  %v789_v33 = vrot.slane %v3496_v62, 2  ;;  %v1201_v24 = vadd.f32 1.0, %v2584_v16 }
  0xc1   : > { %v749_v28 = vsel %vm4187_vm2, %v740_v60, %v741_v54  ;;  %v3590_v30 = vadd.f32 %v1139_v37, %v1124_v39  ;;  %v725_v63 = vsel %vm707_vm8, %v717_v56, 0.0  ;;  %vm4188_vm6 = vmmov %vm4187_vm2  ;;  %v790_v9 = vrot.slane %v3499_v52, 2 }
  0xc2   : > { %v765_v57 = vmul.f32 %v3230_v58, %v749_v28  ;;  %v733_v49 = vadd.f32 %v725_v63, %v685_v5  ;;  %v734_v51 = vadd.f32 %v718_v61, %v686_v46  ;;  %v748_v59 = vsel %vm4188_vm6, %v741_v54, %v742_v20 }
  0xc3   : > { %v1209_v60 = vmul.f32 0.5, %v1201_v24  ;;  %v1155_v38 = vmul.f32 %v3590_v30, %v3590_v30  ;;  %v766_v37 = vmul.f32 %v3230_v58, %v748_v59  ;;  %v796_v5 = vsel %vm793_vm10, %v789_v33, %v790_v9 }
  0xc4   : > { %v773_v48 = vsel %vm755_vm9, %v765_v57, 0.0  ;;  %v797_v54 = vsel %vm793_vm10, %v788_v43, %v789_v33  ;;  %v837_v46 = vrot.slane %v3496_v62, 1  ;;  %v814_v24 = vmul.f32 %v3253_v6, %v796_v5 }
  0xc5   : > { %v781_v39 = vadd.f32 %v773_v48, %v733_v49  ;;  %v1217_v21 = vmul.f32 %v1209_v60, %v3437_v27  ;;  %v1163_v56 = vmul.f32 %v1155_v38, %v3590_v30  ;;  %v782_v16 = vadd.f32 %v766_v37, %v734_v51 }
  0xc6   : > { %v813_v61 = vmul.f32 %v3253_v6, %v797_v54  ;;  %v838_v63 = vrot.slane %v3499_v52, 1  ;;  %v845_v57 = vsel %vm841_vm11, %v836_v55, %v837_v46  ;;  %v893_v43 = vmul.f32 %v3263_v19, %v3496_v62 }
  0xc7   : > { %v1224_v33 = vpack.c.bf16 %v1217_v21, %v3539_v13  ;;  %v1171_v27 = vmul.f32 0.044715, %v1163_v56  ;;  %v861_v51 = vmul.f32 %v3261_v18, %v845_v57  ;;  %v830_v60 = vadd.f32 %v814_v24, %v782_v16 }
  0xc8   : > { %v821_v49 = vsel %vm803_vm12, %v813_v61, 0.0  ;;  %v844_v38 = vsel %vm841_vm11, %v837_v46, %v838_v63  ;;  %v924_v55 = vmul.f32 %v3269_v34, %v3529_v50  ;;  %v986_v46 = vmul.f32 %v3278_v41, %v3558_v8 }
  0xc9   : > { %v829_v59 = vadd.f32 %v821_v49, %v781_v39  ;;  %1369 = vmatmul.mubr.bf16.vlgmr.msra.gmra.mxu0 %v1224_v33  ;;  %v1179_v37 = vadd.f32 %v1171_v27, %v3590_v30  ;;  %v862_v13 = vmul.f32 %v3261_v18, %v844_v38  ;;  %v869_v48 = vsel %vm851_vm13, %v861_v51, 0.0 }
  0xca   : > { %v955_v39 = vmul.f32 %v3271_v35, %v3545_v12  ;;  %1378 = vmatprep.mubr.bf16.mxu0 %v2879_v0  ;;  %v1017_v50 = vmul.f32 %v3280_v42, %v701_v2  ;;  %v2586_v21 = vpop.eup %2585  ;;  %v932_v61 = vsel %vm914_vm14, %v924_v55, 0.0  ;;  %v1048_v24 = vmul.f32 %v3282_v44, %v749_v28 }
  0xcb   : > { %v877_v5 = vadd.f32 %v869_v48, %v829_v59  ;;  %v1187_v56 = vmul.f32 0.7978846, %v1179_v37  ;;  %v878_v16 = vadd.f32 %v862_v13, %v830_v60  ;;  %v1202_v33 = vadd.f32 1.0, %v2586_v21  ;;  %v3657_v59 = vld [vmem:[%s3114_s1 + $0x30] sm:$0xff] }
  0xcc   : > { %v963_v12 = vsel %vm945_vm15, %v955_v39, 0.0  ;;  %v994_v27 = vsel %vm976_vm5, %v986_v46, 0.0  ;;  %v1079_v49 = vmul.f32 %v3308_v3, %v797_v54  ;;  %v1025_v2 = vsel %vm1007_vm3, %v1017_v50, 0.0 }
  0xcd   : > { %2587 = vtanh.f32 %v1187_v56  ;;  %v909_v8 = vadd.f32 %v893_v43, %v878_v16  ;;  %v1110_v51 = vmul.f32 %v3310_v4, %v845_v57  ;;  %v1210_v60 = vmul.f32 0.5, %v1202_v33 }
  0xce   : > { %v1056_v28 = vsel %vm1038_vm4, %v1048_v24, 0.0  ;;  %v1087_v38 = vsel %vm4142_vm7, %v1079_v49, 0.0  ;;  %v1140_v55 = vmul.f32 %v3320_v17, %v3496_v62  ;;  %vm4189_vm0 = vcmp.ge.s32.totalorder %v3133_v10, 15 }
  0xcf   : > { %v940_v54 = vadd.f32 %v932_v61, %v909_v8  ;;  %v1118_v43 = vsel %vm4189_vm0, %v1110_v51, 0.0  ;;  %v1141_v37 = vmul.f32 %v3320_v17, %v3499_v52  ;;  %v543_v57 = vmul.f32 %v3152_v15, %v3657_v59 }
  0xd0   : > { %v3671_v13 = vadd.f32 %v1140_v55, %v877_v5  ;;  %v544_v48 = vmul.f32 %v3152_v15, %v3150_v14  ;;  %v551_v39 = vrot.slane %v3657_v59, 7  ;;  %v599_v46 = vrot.slane %v3657_v59, 6 }
  0xd1   : > { %v971_v50 = vadd.f32 %v963_v12, %v940_v54  ;;  %v647_v21 = vrot.slane %v3657_v59, 5  ;;  %v695_v56 = vrot.slane %v3657_v59, 4  ;;  %v743_v16 = vrot.slane %v3657_v59, 3 }
  0xd2   : > { %v1156_v61 = vmul.f32 %v3671_v13, %v3671_v13  ;;  %vm4190_vm2 = vcmp.lt.s32.totalorder %v3130_v7, 1  ;;  %vm4192_vm0 = vcmp.lt.s32.totalorder %v3130_v7, 2 }
  0xd3   : > { %v554_v5 = vsel %vm4190_vm2, %v551_v39, %v552_v22  ;;  %vm4191_vm6 = vmmov %vm4190_vm2  ;;  %v602_v24 = vsel %vm4192_vm0, %v599_v46, %v600_v25  ;;  %v1002_v33 = vadd.f32 %v994_v27, %v971_v50  ;;  %vm4194_vm2 = vcmp.lt.s32.totalorder %v3130_v7, 3 }
  0xd4   : > { %v555_v15 = vsel %vm4191_vm6, %v550_v29, %v551_v39  ;;  %v576_v49 = vmul.f32 %v3162_v23, %v554_v5  ;;  %vm4193_vm7 = vmmov %vm4192_vm0  ;;  %v1164_v8 = vmul.f32 %v1156_v61, %v3671_v13  ;;  %v624_v51 = vmul.f32 %v3167_v26, %v602_v24 }
  0xd5   : > { %v575_v12 = vmul.f32 %v3162_v23, %v555_v15  ;;  %v3700_v22 = vsel %vm4193_vm7, %v598_v11, %v599_v46  ;;  %v650_v25 = vsel %vm4194_vm2, %v647_v21, %v648_v31  ;;  %v1033_v27 = vadd.f32 %v1025_v2, %v1002_v33  ;;  %vm4195_vm7 = vmmov %vm4194_vm2 }
  0xd6   : > { %v623_v29 = vmul.f32 %v3167_v26, %v3700_v22  ;;  %v592_v55 = vadd.f32 %v576_v49, %v544_v48  ;;  %v3716_v11 = vsel %vm4195_vm7, %v646_v1, %v647_v21  ;;  %v1172_v54 = vmul.f32 0.044715, %v1164_v8 }
  0xd7   : > { %v583_v23 = vsel %vm563_vm1, %v575_v12, 0.0  ;;  %vm4196_vm6 = vcmp.ge.s32.totalorder %v3130_v7, 2  ;;  %v671_v46 = vmul.f32 %v3182_v32, %v3716_v11  ;;  %v1064_v31 = vadd.f32 %v1056_v28, %v1033_v27 }
  0xd8   : > { %v591_v39 = vadd.f32 %v583_v23, %v543_v57  ;;  %v631_v26 = vsel %vm4196_vm6, %v623_v29, 0.0  ;;  %v640_v2 = vadd.f32 %v624_v51, %v592_v55  ;;  %v672_v50 = vmul.f32 %v3182_v32, %v650_v25 }
  0xd9   : > { %v4197_v48 = vrot.slane %v3150_v14, 4  ;;  %vm4198_vm1 = vcmp.lt.s32.totalorder %v3130_v7, 4  ;;  %v1180_v1 = vadd.f32 %v1172_v54, %v3671_v13  ;;  %vm4199_vm0 = vcmp.ge.s32.totalorder %v3130_v7, 3 }
  0xda   : > { %v639_v21 = vadd.f32 %v631_v26, %v591_v39  ;;  %v679_v57 = vsel %vm4199_vm0, %v671_v46, 0.0  ;;  %vm4200_vm2 = vmmov %vm4198_vm1  ;;  %v1095_v28 = vadd.f32 %v1087_v38, %v1064_v31  ;;  %v688_v24 = vadd.f32 %v672_v50, %v640_v2  ;;  %v2588_v12 = vpop.eup %2587 }
  0xdb   : > { %v698_v61 = vsel %vm4198_vm1, %v695_v56, %v4197_v48  ;;  %v699_v5 = vsel %vm4200_vm2, %v694_v40, %v695_v56  ;;  %v1188_v49 = vmul.f32 0.7978846, %v1180_v1  ;;  %v4201_v29 = vrot.slane %v3150_v14, 3 }
  0xdc   : > { %v719_v32 = vmul.f32 %v3223_v53, %v699_v5  ;;  %v720_v33 = vmul.f32 %v3223_v53, %v698_v61  ;;  %v687_v8 = vadd.f32 %v679_v57, %v639_v21  ;;  %vm4202_vm7 = vcmp.lt.s32.totalorder %v3130_v7, 5 }
  0xdd   : > { %v746_v51 = vsel %vm4202_vm7, %v743_v16, %v4201_v29  ;;  %vm4203_vm6 = vmmov %vm4202_vm7  ;;  %v1203_v40 = vadd.f32 1.0, %v2588_v12  ;;  %v1126_v38 = vadd.f32 %v1118_v43, %v1095_v28  ;;  %v1218_v53 = vmul.f32 %v1210_v60, %v3507_v45 }
  0xde   : > { %v747_v25 = vsel %vm4203_vm6, %v742_v20, %v743_v16  ;;  %v727_v56 = vsel %vm707_vm8, %v719_v32, 0.0  ;;  %v736_v27 = vadd.f32 %v720_v33, %v688_v24  ;;  %v768_v54 = vmul.f32 %v3230_v58, %v746_v51 }
  0xdf   : > { %v735_v23 = vadd.f32 %v727_v56, %v687_v8  ;;  %v767_v55 = vmul.f32 %v3230_v58, %v747_v25  ;;  %v1211_v39 = vmul.f32 0.5, %v1203_v40  ;;  %v3749_v26 = vadd.f32 %v1141_v37, %v1126_v38 }
  0xe0   : > { %v791_v46 = vrot.slane %v3657_v59, 2  ;;  %v839_v20 = vrot.slane %v3657_v59, 1  ;;  %2589 = vtanh.f32 %v1188_v49  ;;  %v784_v16 = vadd.f32 %v768_v54, %v736_v27 }
  0xe1   : > { %v775_v43 = vsel %vm755_vm9, %v767_v55, 0.0  ;;  %v926_v31 = vmul.f32 %v3269_v34, %v555_v15  ;;  %v1219_v45 = vmul.f32 %v1211_v39, %v3590_v30  ;;  %v1157_v60 = vmul.f32 %v3749_v26, %v3749_v26 }
  0xe2   : > { %v783_v58 = vadd.f32 %v775_v43, %v735_v23  ;;  %v4204_v37 = vrot.slane %v3150_v14, 2  ;;  %v795_v50 = vsel %vm793_vm10, %v790_v9, %v791_v46  ;;  %v4205_v34 = vrot.slane %v3150_v14, 1 }
  0xe3   : > { %v843_v15 = vsel %vm841_vm11, %v838_v63, %v839_v20  ;;  %v1225_v61 = vpack.c.bf16 %v1219_v45, %v1218_v53  ;;  %v1165_v1 = vmul.f32 %v1157_v60, %v3749_v26  ;;  %v815_v21 = vmul.f32 %v3253_v6, %v795_v50 }
  0xe4   : > { %v794_v2 = vsel %vm793_vm10, %v791_v46, %v4204_v37  ;;  %v842_v30 = vsel %vm841_vm11, %v839_v20, %v4205_v34  ;;  %v863_v57 = vmul.f32 %v3261_v18, %v843_v15  ;;  %v895_v14 = vmul.f32 %v3263_v19, %v3657_v59 }
  0xe5   : > { %v816_v48 = vmul.f32 %v3253_v6, %v794_v2  ;;  %v864_v28 = vmul.f32 %v3261_v18, %v842_v30  ;;  %1379 = vmatmul.mubr.bf16.gmra.mxu0 %v1225_v61  ;;  %v1173_v24 = vmul.f32 0.044715, %v1165_v1  ;;  %v823_v32 = vsel %vm803_vm12, %v815_v21, 0.0 }
  0xe6   : > { %v871_v63 = vsel %vm851_vm13, %v863_v57, 0.0  ;;  %v957_v33 = vmul.f32 %v3271_v35, %v3700_v22  ;;  %1388 = vmatprep.mubr.bf16.mxu0 %v2879_v0  ;;  %v831_v6 = vadd.f32 %v823_v32, %v783_v58  ;;  %v934_v19 = vsel %vm914_vm14, %v926_v31, 0.0 }
  0xe7   : > { %v832_v9 = vadd.f32 %v816_v48, %v784_v16  ;;  %v1181_v18 = vadd.f32 %v1173_v24, %v3749_v26  ;;  %v988_v49 = vmul.f32 %v3278_v41, %v3716_v11  ;;  %v1019_v35 = vmul.f32 %v3280_v42, %v699_v5 }
  0xe8   : > { %v879_v8 = vadd.f32 %v871_v63, %v831_v6  ;;  %v965_v40 = vsel %vm945_vm15, %v957_v33, 0.0  ;;  %v1142_v22 = vmul.f32 %v3320_v17, %v3657_v59  ;;  %v1050_v27 = vmul.f32 %v3282_v44, %v747_v25 }
  0xe9   : > { %v880_v12 = vadd.f32 %v864_v28, %v832_v9  ;;  %v1189_v51 = vmul.f32 0.7978846, %v1181_v18  ;;  %v996_v56 = vsel %vm976_vm5, %v988_v49, 0.0  ;;  %v1027_v23 = vsel %vm1007_vm3, %v1019_v35, 0.0  ;;  %v1244_v18 = vld [vmem:[%s4112_s4] sm:$0x3] }
  0xea   : > { %v1150_v53 = vadd.f32 %v1142_v22, %v879_v8  ;;  %v1081_v55 = vmul.f32 %v3308_v3, %v795_v50  ;;  %v1058_v54 = vsel %vm1038_vm4, %v1050_v27, 0.0  ;;  %v1112_v39 = vmul.f32 %v3310_v4, %v843_v15  ;;  %v3813_v3 = vld [vmem:[%s3114_s1 + $0x38] sm:$0xff] }
  0xeb   : > { %v911_v29 = vadd.f32 %v895_v14, %v880_v12  ;;  %2591 = vtanh.f32 %v1189_v51  ;;  %vm4206_vm5 = vcmp.ge.s32.totalorder %v3133_v10, 14  ;;  %vm4207_vm8 = vcmp.ge.s32.totalorder %v3133_v10, 15 }
  0xec   : > { %v1158_v42 = vmul.f32 %v1150_v53, %v1150_v53  ;;  %v1089_v44 = vsel %vm4206_vm5, %v1081_v55, 0.0  ;;  %v1120_v31 = vsel %vm4207_vm8, %v1112_v39, 0.0  ;;  %v1143_v60 = vmul.f32 %v3813_v3, %v3320_v17 }
  0xed   : > { %v942_v38 = vadd.f32 %v934_v19, %v911_v29  ;;  %v2590_v11 = vpop.eup %2589 }
  0xee   : > { %v1166_v46 = vmul.f32 %v1158_v42, %v1150_v53  ;;  %v1204_v16 = vadd.f32 1.0, %v2590_v11 }
  0xef   : > { %v973_v41 = vadd.f32 %v965_v40, %v942_v38 }
  0xf0   : > { %v1174_v25 = vmul.f32 0.044715, %v1166_v46  ;;  %v1212_v4 = vmul.f32 0.5, %v1204_v16 }
  0xf1   : > { %v1004_v5 = vadd.f32 %v996_v56, %v973_v41 }
  0xf2   : > { %v1182_v58 = vadd.f32 %v1174_v25, %v1150_v53  ;;  %v1220_v61 = vmul.f32 %v1212_v4, %v3671_v13  ;;  %v2663_v4 = vld [vmem:[%s3114_s1 + $0x8] sm:$0xff] }
  0xf3   : > { %v1035_v20 = vadd.f32 %v1027_v23, %v1004_v5  ;;  %v1248_v23 = vsub.s32 0, %v3130_v7 }
  0xf4   : > { %v1190_v48 = vmul.f32 0.7978846, %v1182_v58 }
  0xf5   : > { %v1066_v43 = vadd.f32 %v1058_v54, %v1035_v20  ;;  %v3834_v54 = vrot.slane %v1244_v18, %v1248_v23 }
  0xf6   : > { %2593 = vtanh.f32 %v1190_v48 }
  0xf7   : > { %v1097_v45 = vadd.f32 %v1089_v44, %v1066_v43 }
  0xf8   : > { %v2592_v2 = vpop.eup %2591 }
  0xf9   : > { %v1128_v37 = vadd.f32 %v1120_v31, %v1097_v45  ;;  %v1205_v34 = vadd.f32 1.0, %v2592_v2  ;;  %v2662_v45 = vld [vmem:[%s3114_s1] sm:$0xff] }
  0xfb   : > { %v1151_v50 = vadd.f32 %v1143_v60, %v1128_v37  ;;  %v1213_v15 = vmul.f32 0.5, %v1205_v34 }
  0xfd   : > { %v1159_v30 = vmul.f32 %v1151_v50, %v1151_v50  ;;  %v1221_v10 = vmul.f32 %v1213_v15, %v3749_v26  ;;  %v1252_v26 = vsub.s32 1, %v3130_v7 }
  0xff   : > { %v1167_v1 = vmul.f32 %v1159_v30, %v1151_v50  ;;  %v1226_v57 = vpack.c.bf16 %v1221_v10, %v1220_v61  ;;  %v3826_v19 = vrot.slane %v1244_v18, %v1252_v26 }
 0x101   : > { %v1175_v21 = vmul.f32 0.044715, %v1167_v1  ;;  %1389 = vmatmul.mubr.bf16.gmra.mxu0 %v1226_v57 }
 0x102   : > { %1398 = vmatprep.mubr.bf16.mxu0 %v2879_v0 }
 0x103   : > { %v1183_v9 = vadd.f32 %v1175_v21, %v1151_v50  ;;  %v2594_v28 = vpop.eup %2593 }
 0x104   : > { %v1206_v14 = vadd.f32 1.0, %v2594_v28 }
 0x105   : > { %v1191_v17 = vmul.f32 0.7978846, %v1183_v9 }
 0x106   : > { %v1214_v24 = vmul.f32 0.5, %v1206_v14 }
 0x107   : > { %2595 = vtanh.f32 %v1191_v17 }
 0x108   : > { %v1222_v6 = vmul.f32 %v1214_v24, %v1150_v53 }
 0x114   : > { %v2596_v32 = vpop.eup %2595 }
 0x115   : > { %v1207_v63 = vadd.f32 1.0, %v2596_v32 }
 0x117   : > { %v1215_v33 = vmul.f32 0.5, %v1207_v63 }
 0x119   : > { %v1223_v13 = vmul.f32 %v1215_v33, %v1151_v50 }
 0x11b   : > { %v1227_v12 = vpack.c.bf16 %v1223_v13, %v1222_v6 }
 0x11d   : > { %1399 = vmatmul.mubr.bf16.gmra.mxu0 %v1227_v12 }
 0x189   : > { %v1370_v49 = vpop.f32.mrf.mxu0 }
 0x18a   : > { %v1371_v44 = vadd.f32 %v1370_v49, %v3834_v54 }
 0x18b   : > { %v1372_v8 = vpop.f32.mrf.mxu0 }
 0x18c   : > { %v1373_v29 = vadd.f32 %v1372_v8, %v3826_v19 }
 0x18d   : > { %v1374_v51 = vpop.f32.mrf.mxu0 }
 0x18e   : > { %v2312_v40 = vmul.f32 -1.442695, %v1373_v29  ;;  %v1375_v31 = vadd.f32 %v1374_v51, %v3834_v54 }
 0x18f   : > { %v1376_v35 = vpop.f32.mrf.mxu0 }
 0x190   : > { %2597 = vpow2.f32 %v2312_v40  ;;  %v1377_v22 = vadd.f32 %v1376_v35, %v3826_v19 }
 0x192   : > { %v2313_v38 = vmul.f32 -1.442695, %v1377_v22 }
 0x194   : > { %2599 = vpow2.f32 %v2313_v38 }
 0x19d   : > { %v2598_v56 = vpop.eup %2597 }
 0x19e   : > { %v1433_v27 = vadd.f32 1.0, %v2598_v56 }
 0x1a0   : > { %2601 = vrcp.f32 %v1433_v27 }
 0x1a1   : > { %v2600_v53 = vpop.eup %2599 }
 0x1a2   : > { %v1434_v41 = vadd.f32 1.0, %v2600_v53 }
 0x1a4   : > { %2603 = vrcp.f32 %v1434_v41 }
 0x1a5   : > { %v1380_v11 = vpop.f32.mrf.mxu0 }
 0x1a6   : > { %v1381_v9 = vadd.f32 %v1380_v11, %v3834_v54 }
 0x1a7   : > { %v1382_v55 = vpop.f32.mrf.mxu0 }
 0x1a8   : > { %v1383_v42 = vadd.f32 %v1382_v55, %v3826_v19 }
 0x1a9   : > { %v1384_v5 = vpop.f32.mrf.mxu0 }
 0x1aa   : > { %v2314_v39 = vmul.f32 -1.442695, %v1383_v42  ;;  %v1385_v32 = vadd.f32 %v1384_v5, %v3834_v54 }
 0x1ab   : > { %v1386_v46 = vpop.f32.mrf.mxu0 }
 0x1ac   : > { %2605 = vpow2.f32 %v2314_v39  ;;  %v1387_v20 = vadd.f32 %v1386_v46, %v3826_v19 }
 0x1ad   : > { %v2602_v43 = vpop.eup %2601 }
 0x1ae   : > { %v2315_v25 = vmul.f32 -1.442695, %v1387_v20  ;;  %v1457_v16 = vmul.f32 %v2602_v43, %v1371_v44 }
 0x1b0   : > { %2607 = vpow2.f32 %v2315_v25  ;;  %v3840_v60 = vadd.f32 %v2662_v45, %v1457_v16 }
 0x1b1   : > { %v2604_v58 = vpop.eup %2603 }
 0x1b2   : > { %1475 = vadd.xlane.f32.xlu0 %v3840_v60  ;;  %v1458_v37 = vmul.f32 %v2604_v58, %v1375_v31  ;;  %v2541_v58 = vld [vmem:[#allocation8 + $0x74] ss:$8 sps:$4 sm:$0xff]  }
 0x1b3   : > { %1704 = vmatprep.subr.bf16.mxu1 %v2541_v58 }
 0x1b4   : > { %v3844_v2 = vadd.f32 %v2663_v4, %v1458_v37  ;;  %v2543_v37 = vld [vmem:[#allocation8 + $0x70] ss:$8 sps:$4 sm:$0xff]  }
 0x1b5   : > { %1705 = vmatpush1.bf16.msra.mxu1 %v2543_v37 }
 0x1b6   : > { %1477 = vadd.xlane.f32.xlu0 %v3844_v2 }
 0x1b9   : > { %v2606_v50 = vpop.eup %2605 }
 0x1ba   : > { %v1435_v48 = vadd.f32 1.0, %v2606_v50 }
 0x1bc   : > { %2609 = vrcp.f32 %v1435_v48 }
 0x1bd   : > { %v2608_v34 = vpop.eup %2607 }
 0x1be   : > { %v1436_v30 = vadd.f32 1.0, %v2608_v34 }
 0x1c0   : > { %2611 = vrcp.f32 %v1436_v30 }
 0x1c1   : > { %v1390_v15 = vpop.f32.mrf.mxu0 }
 0x1c2   : > { %v1391_v56 = vadd.f32 %v1390_v15, %v3834_v54  ;;  %v2544_v15 = vld [vmem:[#allocation8 + $0x64] ss:$8 sps:$4 sm:$0xff]  }
 0x1c3   : > { %v1392_v61 = vpop.f32.mrf.mxu0  ;;  %1706 = vmatprep.subr.bf16.mxu1 %v2544_v15 }
 0x1c4   : > { %v1393_v1 = vadd.f32 %v1392_v61, %v3826_v19  ;;  %v2546_v61 = vld [vmem:[#allocation8 + $0x60] ss:$8 sps:$4 sm:$0xff]  }
 0x1c5   : > { %v1394_v10 = vpop.f32.mrf.mxu0  ;;  %1707 = vmatpush1.bf16.msra.mxu1 %v2546_v61 }
 0x1c6   : > { %v2316_v21 = vmul.f32 -1.442695, %v1393_v1  ;;  %v1395_v41 = vadd.f32 %v1394_v10, %v3834_v54  ;;  %v2547_v1 = vld [vmem:[#allocation8 + $0x54] ss:$8 sps:$4 sm:$0xff]  }
 0x1c7   : > { %v1396_v57 = vpop.f32.mrf.mxu0  ;;  %1708 = vmatprep.subr.bf16.mxu1 %v2547_v1  ;;  %v3932_v1 = vld [vmem:[%s4114_s6] ss:$0 sm:$0xff] }
 0x1c8   : > { %2613 = vpow2.f32 %v2316_v21  ;;  %v1397_v17 = vadd.f32 %v1396_v57, %v3826_v19 }
 0x1c9   : > { %v2610_v28 = vpop.eup %2609 }
 0x1ca   : > { %v2317_v14 = vmul.f32 -1.442695, %v1397_v17  ;;  %v1459_v24 = vmul.f32 %v2610_v28, %v1381_v9 }
 0x1cc   : > { %2615 = vpow2.f32 %v2317_v14  ;;  %v3852_v63 = vadd.f32 %v1459_v24, %v3329_v36  ;;  %v2550_v24 = vld [vmem:[#allocation8 + $0x44] ss:$8 sps:$4 sm:$0xff]  }
 0x1cd   : > { %v2612_v33 = vpop.eup %2611 }
 0x1ce   : > { %1479 = vadd.xlane.f32.xlu1 %v3852_v63  ;;  %v1460_v6 = vmul.f32 %v2612_v33, %v1385_v32  ;;  %v2552_v32 = vld [vmem:[#allocation8 + $0x40] ss:$8 sps:$4 sm:$0xff]   ;;  %v2553_v33 = vld [vmem:[#allocation8 + $0x34] ss:$8 sps:$4 sm:$0xff]  }
 0x1d0   : > { %v3856_v13 = vadd.f32 %v1460_v6, %v3336_v47 }
 0x1d2   : > { %1481 = vadd.xlane.f32.xlu1 %v3856_v13 }
 0x1d5   : > { %v2614_v12 = vpop.eup %2613 }
 0x1d6   : > { %v1437_v18 = vadd.f32 1.0, %v2614_v12 }
 0x1d8   : > { %2617 = vrcp.f32 %v1437_v18 }
 0x1d9   : > { %v2616_v49 = vpop.eup %2615 }
 0x1da   : > { %v1438_v8 = vadd.f32 1.0, %v2616_v49 }
 0x1dc   : > { %2619 = vrcp.f32 %v1438_v8 }
 0x1dd   : > { %v1400_v29 = vpop.f32.mrf.mxu0 }
 0x1de   : > { %v1401_v44 = vadd.f32 %v1400_v29, %v3834_v54 }
 0x1df   : > { %v1402_v51 = vpop.f32.mrf.mxu0 }
 0x1e0   : > { %v1403_v36 = vadd.f32 %v1402_v51, %v3826_v19 }
 0x1e1   : > { %v1404_v40 = vpop.f32.mrf.mxu0 }
 0x1e2   : > { %v2318_v35 = vmul.f32 -1.442695, %v1403_v36  ;;  %v1405_v43 = vadd.f32 %v1404_v40, %v3834_v54  ;;  %v2556_v36 = vld [vmem:[#allocation8 + $0x24] ss:$8 sps:$4 sm:$0xff]   ;;  %v2558_v40 = vld [vmem:[#allocation8 + $0x20] ss:$8 sps:$4 sm:$0xff]  }
 0x1e3   : > { %v1406_v22 = vpop.f32.mrf.mxu0 }
 0x1e4   : > { %2621 = vpow2.f32 %v2318_v35  ;;  %v1407_v38 = vadd.f32 %v1406_v22, %v3826_v19  ;;  %v2559_v22 = vld [vmem:[#allocation8 + $0x14] ss:$8 sps:$4 sm:$0xff]  }
 0x1e5   : > { %v2618_v27 = vpop.eup %2617 }
 0x1e6   : > { %v2319_v47 = vmul.f32 -1.442695, %v1407_v38  ;;  %v1461_v53 = vmul.f32 %v2618_v27, %v1391_v56  ;;  %v2561_v38 = vld [vmem:[#allocation8 + $0x10] ss:$8 sps:$4 sm:$0xff]  }
 0x1e8   : > { %2623 = vpow2.f32 %v2319_v47  ;;  %v3864_v11 = vadd.f32 %v1461_v53, %v3496_v62 }
 0x1e9   : > { %v2620_v55 = vpop.eup %2619 }
 0x1ea   : > { %1483 = vadd.xlane.f32.xlu0 %v3864_v11  ;;  %v1462_v42 = vmul.f32 %v2620_v55, %v1395_v41 }
 0x1ec   : > { %v3868_v5 = vadd.f32 %v1462_v42, %v3499_v52  ;;  %v2562_v42 = vld [vmem:[#allocation8 + $0x4] ss:$8 sps:$4 sm:$0xff]  }
 0x1ee   : > { %1485 = vadd.xlane.f32.xlu1 %v3868_v5 }
 0x1f1   : > { %v2622_v39 = vpop.eup %2621 }
 0x1f2   : > { %v1439_v19 = vadd.f32 1.0, %v2622_v39  ;;  %v2565_v39 = vld [vmem:[#allocation10 + $0x78] sm:$0xff]  }
 0x1f3   : > { %2367 = vmatprep.subr.bf16.mxu0 %v2565_v39 }
 0x1f4   : > { %2625 = vrcp.f32 %v1439_v19  ;;  %v2566_v19 = vld [vmem:[#allocation10 + $0x38] sm:$0xff]  }
 0x1f5   : > { %v2624_v46 = vpop.eup %2623  ;;  %2368 = vmatpush3.bf16.msra.mxu0 %v2566_v19 }
 0x1f6   : > { %v1440_v20 = vadd.f32 1.0, %v2624_v46  ;;  %v2567_v46 = vld [vmem:[#allocation10 + $0x70] sm:$0xff]  }
 0x1f7   : > { %2369 = vmatprep.subr.bf16.mxu0 %v2567_v46 }
 0x1f8   : > { %2627 = vrcp.f32 %v1440_v20  ;;  %v2568_v20 = vld [vmem:[#allocation10 + $0x30] sm:$0xff]  }
 0x1f9   : > { %2370 = vmatpush3.bf16.msra.mxu0 %v2568_v20 }
 0x201   : > { %v2626_v25 = vpop.eup %2625 }
 0x202   : > { %v1463_v62 = vmul.f32 %v2626_v25, %v1401_v44  ;;  %v2569_v44 = vld [vmem:[#allocation10 + $0x68] sm:$0xff]  }
 0x203   : > { %v2570_v25 = vld [vmem:[#allocation10 + $0x28] sm:$0xff]   ;;  %2371 = vmatprep.subr.bf16.mxu0 %v2569_v44 }
 0x204   : > { %v3874_v16 = vadd.f32 %v1463_v62, %v3657_v59  ;;  %v2571_v62 = vld [vmem:[#allocation10 + $0x60] sm:$0xff]   ;;  %2372 = vmatpush3.bf16.msra.mxu0 %v2570_v25 }
 0x205   : > { %v2628_v31 = vpop.eup %2627  ;;  %2373 = vmatprep.subr.bf16.mxu0 %v2571_v62 }
 0x206   : > { %1487 = vadd.xlane.f32.xlu0 %v3874_v16  ;;  %v1464_v52 = vmul.f32 %v2628_v31, %v1405_v43  ;;  %v2572_v43 = vld [vmem:[#allocation10 + $0x20] sm:$0xff]   ;;  %v2574_v31 = vld [vmem:[#allocation10 + $0x18] sm:$0xff]  }
 0x208   : > { %v3878_v45 = vadd.f32 %v3813_v3, %v1464_v52  ;;  %2374 = vmatpush3.bf16.msra.mxu0 %v2572_v43 }
 0x20a   : > { %1489 = vadd.xlane.f32.xlu1 %v3878_v45 }
 0x23b   : > { %v1476_v4 = vpop.xlane.xlu0 %1475 }
 0x23c   : > { %v1492_v50 = vmul.f32 0.0078125, %v1476_v4 }
 0x23e   : > { %v3882_v54 = vsub.f32 %v3840_v60, %v1492_v50  ;;  %v2549_v60 = vld [vmem:[#allocation8 + $0x50] ss:$8 sps:$4 sm:$0xff]  }
 0x23f   : > { %v1478_v59 = vpop.xlane.xlu0 %1477  ;;  %1709 = vmatpush1.bf16.msra.mxu1 %v2549_v60 }
 0x240   : > { %v1493_v48 = vmul.f32 0.0078125, %v1478_v59  ;;  %v1508_v34 = vmul.f32 %v3882_v54, %v3882_v54  ;;  %1710 = vmatprep.subr.bf16.mxu1 %v2550_v24 }
 0x242   : > { %v3887_v30 = vsub.f32 %v3844_v2, %v1493_v48  ;;  %1516 = vadd.xlane.f32.xlu0 %v1508_v34  ;;  %v3925_v34 = vld [vmem:[%s4113_s5] ss:$0 sm:$0xff] }
 0x243   : > { %1711 = vmatpush1.bf16.msra.mxu1 %v2552_v32 }
 0x244   : > { %v1509_v3 = vmul.f32 %v3887_v30, %v3887_v30  ;;  %1712 = vmatprep.subr.bf16.mxu1 %v2553_v33 }
 0x246   : > { %1518 = vadd.xlane.f32.xlu1 %v1509_v3 }
 0x257   : > { %v1480_v10 = vpop.xlane.xlu1 %1479 }
 0x258   : > { %v1494_v21 = vmul.f32 0.0078125, %v1480_v10 }
 0x25a   : > { %v3892_v57 = vsub.f32 %v3852_v63, %v1494_v21  ;;  %v2555_v63 = vld [vmem:[#allocation8 + $0x30] ss:$8 sps:$4 sm:$0xff]  }
 0x25b   : > { %v1482_v2 = vpop.xlane.xlu1 %1481  ;;  %1713 = vmatpush1.bf16.msra.mxu1 %v2555_v63 }
 0x25c   : > { %v1495_v9 = vmul.f32 0.0078125, %v1482_v2  ;;  %v1510_v17 = vmul.f32 %v3892_v57, %v3892_v57  ;;  %1714 = vmatprep.subr.bf16.mxu1 %v2556_v36 }
 0x25e   : > { %v3897_v28 = vsub.f32 %v3856_v13, %v1495_v9  ;;  %1520 = vadd.xlane.f32.xlu0 %v1510_v17 }
 0x25f   : > { %1715 = vmatpush1.bf16.msra.mxu1 %v2558_v40 }
 0x260   : > { %v1511_v14 = vmul.f32 %v3897_v28, %v3897_v28  ;;  %1716 = vmatprep.subr.bf16.mxu1 %v2559_v22 }
 0x262   : > { %1522 = vadd.xlane.f32.xlu1 %v1511_v14 }
 0x263   : > { %1717 = vmatpush1.bf16.msra.mxu1 %v2561_v38 }
 0x264   : > { %1718 = vmatprep.subr.bf16.mxu1 %v2562_v42 }
 0x273   : > { %v1484_v6 = vpop.xlane.xlu0 %1483 }
 0x274   : > { %v1496_v12 = vmul.f32 0.0078125, %v1484_v6 }
 0x276   : > { %v3902_v18 = vsub.f32 %v3864_v11, %v1496_v12 }
 0x277   : > { %v1486_v13 = vpop.xlane.xlu1 %1485 }
 0x278   : > { %v1497_v49 = vmul.f32 0.0078125, %v1486_v13  ;;  %v1512_v8 = vmul.f32 %v3902_v18, %v3902_v18 }
 0x27a   : > { %v3907_v29 = vsub.f32 %v3868_v5, %v1497_v49  ;;  %1524 = vadd.xlane.f32.xlu0 %v1512_v8  ;;  %v2564_v5 = vld [vmem:[#allocation8] ss:$8 sps:$4 sm:$0xff]  }
 0x27b   : > { %1719 = vmatpush1.bf16.msra.mxu1 %v2564_v5 }
 0x27c   : > { %v1513_v51 = vmul.f32 %v3907_v29, %v3907_v29  ;;  %2407 = vmatprep.subr.bf16.mxu1 %v2565_v39 }
 0x27e   : > { %1526 = vadd.xlane.f32.xlu1 %v1513_v51 }
 0x28f   : > { %v1488_v35 = vpop.xlane.xlu0 %1487 }
 0x290   : > { %v1498_v47 = vmul.f32 0.0078125, %v1488_v35 }
 0x292   : > { %v3912_v56 = vsub.f32 %v3874_v16, %v1498_v47  ;;  %v2573_v16 = vld [vmem:[#allocation10 + $0x58] sm:$0xff]  }
 0x293   : > { %v1490_v27 = vpop.xlane.xlu1 %1489  ;;  %2375 = vmatprep.subr.bf16.mxu0 %v2573_v16 }
 0x294   : > { %v1499_v53 = vmul.f32 0.0078125, %v1490_v27  ;;  %v1514_v41 = vmul.f32 %v3912_v56, %v3912_v56  ;;  %2376 = vmatpush3.bf16.msra.mxu0 %v2574_v31 }
 0x296   : > { %v3917_v11 = vsub.f32 %v3878_v45, %v1499_v53  ;;  %1528 = vadd.xlane.f32.xlu0 %v1514_v41 }
 0x298   : > { %v1515_v55 = vmul.f32 %v3917_v11, %v3917_v11 }
 0x29a   : > { %1530 = vadd.xlane.f32.xlu1 %v1515_v55 }
 0x2cb   : > { %v1517_v52 = vpop.xlane.xlu0 %1516 }
 0x2cc   : > { %v1532_v45 = vmul.f32 0.0078125, %v1517_v52 }
 0x2ce   : > { %v1540_v58 = vadd.f32 1e-05, %v1532_v45 }
 0x2cf   : > { %v1519_v37 = vpop.xlane.xlu1 %1518 }
 0x2d0   : > { %2629 = vrsqrt.f32 %v1540_v58  ;;  %v1533_v4 = vmul.f32 0.0078125, %v1519_v37 }
 0x2d2   : > { %v1541_v50 = vadd.f32 1e-05, %v1533_v4  ;;  %v2578_v4 = vld [vmem:[#allocation10 + $0x8] sm:$0xff]  }
 0x2d4   : > { %2631 = vrsqrt.f32 %v1541_v50 }
 0x2dd   : > { %v2630_v59 = vpop.eup %2629 }
 0x2de   : > { %v1556_v48 = vmul.f32 %v2630_v59, %v3882_v54  ;;  %v2580_v59 = vld [vmem:[#allocation10] sm:$0xff]  }
 0x2e0   : > { %v1570_v61 = vmul.f32 %v3925_v34, %v1556_v48  ;;  %v1612_v48 = vld [vmem:[%s4116_s8] sm:$0x3] }
 0x2e1   : > { %v2632_v3 = vpop.eup %2631 }
 0x2e2   : > { %v1557_v15 = vmul.f32 %v2632_v3, %v3887_v30  ;;  %v3936_v54 = vadd.f32 %v3932_v1, %v1570_v61  ;;  %v1621_v3 = vrot.slane %v1612_v48, %v1252_v26 }
 0x2e4   : > { %v1571_v60 = vmul.f32 %v3925_v34, %v1557_v15  ;;  %v1617_v15 = vrot.slane %v1612_v48, %v1248_v23 }
 0x2e6   : > { %v3939_v2 = vadd.f32 %v3932_v1, %v1571_v60 }
 0x2e7   : > { %v1521_v10 = vpop.xlane.xlu0 %1520 }
 0x2e8   : > { %v1534_v21 = vmul.f32 0.0078125, %v1521_v10  ;;  %v1592_v30 = vpack.c.bf16 %v3939_v2, %v3936_v54 }
 0x2ea   : > { %v1542_v9 = vadd.f32 1e-05, %v1534_v21  ;;  %1737 = vmatmul.mubr.bf16.vlgmr.msra.gmra.mxu1 %v1592_v30 }
 0x2eb   : > { %v1523_v17 = vpop.xlane.xlu1 %1522  ;;  %1746 = vmatprep.mubr.bf16.mxu1 %v2879_v0  ;;  %2415 = vmatpush3.bf16.msra.mxu1 %v2566_v19 }
 0x2ec   : > { %2633 = vrsqrt.f32 %v1542_v9  ;;  %v1535_v14 = vmul.f32 0.0078125, %v1523_v17  ;;  %2408 = vmatprep.subr.bf16.mxu1 %v2567_v46 }
 0x2ee   : > { %v1543_v24 = vadd.f32 1e-05, %v1535_v14 }
 0x2ef   : > { %2416 = vmatpush3.bf16.msra.mxu1 %v2568_v20 }
 0x2f0   : > { %2635 = vrsqrt.f32 %v1543_v24  ;;  %2409 = vmatprep.subr.bf16.mxu1 %v2569_v44 }
 0x2f3   : > { %2417 = vmatpush3.bf16.msra.mxu1 %v2570_v25 }
 0x2f4   : > { %2410 = vmatprep.subr.bf16.mxu1 %v2571_v62 }
 0x2f7   : > { %2418 = vmatpush3.bf16.msra.mxu1 %v2572_v43  ;;  %v2575_v43 = vld [vmem:[#allocation10 + $0x50] sm:$0xff]  }
 0x2f8   : > { %2411 = vmatprep.subr.bf16.mxu1 %v2573_v16  ;;  %v2576_v16 = vld [vmem:[#allocation10 + $0x10] sm:$0xff]   ;;  %2377 = vmatprep.subr.bf16.mxu0 %v2575_v43 }
 0x2f9   : > { %v2634_v32 = vpop.eup %2633  ;;  %2378 = vmatpush3.bf16.msra.mxu0 %v2576_v16 }
 0x2fa   : > { %v1558_v33 = vmul.f32 %v2634_v32, %v3892_v57 }
 0x2fb   : > { %2419 = vmatpush3.bf16.msra.mxu1 %v2574_v31 }
 0x2fc   : > { %v1572_v12 = vmul.f32 %v3925_v34, %v1558_v33  ;;  %2412 = vmatprep.subr.bf16.mxu1 %v2575_v43 }
 0x2fd   : > { %v2636_v63 = vpop.eup %2635 }
 0x2fe   : > { %v1559_v6 = vmul.f32 %v2636_v63, %v3897_v28  ;;  %v3949_v49 = vadd.f32 %v3932_v1, %v1572_v12 }
 0x2ff   : > { %2420 = vmatpush3.bf16.msra.mxu1 %v2576_v16 }
 0x300   : > { %v1573_v13 = vmul.f32 %v3925_v34, %v1559_v6 }
 0x302   : > { %v3952_v8 = vadd.f32 %v3932_v1, %v1573_v13 }
 0x303   : > { %v1525_v51 = vpop.xlane.xlu0 %1524 }
 0x304   : > { %v1536_v36 = vmul.f32 0.0078125, %v1525_v51  ;;  %v1593_v57 = vpack.c.bf16 %v3952_v8, %v3949_v49 }
 0x306   : > { %v1544_v40 = vadd.f32 1e-05, %v1536_v36  ;;  %1747 = vmatmul.mubr.bf16.gmra.mxu1 %v1593_v57 }
 0x307   : > { %v1527_v35 = vpop.xlane.xlu1 %1526  ;;  %1756 = vmatprep.mubr.bf16.mxu1 %v2879_v0 }
 0x308   : > { %2637 = vrsqrt.f32 %v1544_v40  ;;  %v1537_v28 = vmul.f32 0.0078125, %v1527_v35 }
 0x30a   : > { %v1545_v22 = vadd.f32 1e-05, %v1537_v28 }
 0x30c   : > { %2639 = vrsqrt.f32 %v1545_v22 }
 0x315   : > { %v2638_v38 = vpop.eup %2637 }
 0x316   : > { %v1560_v47 = vmul.f32 %v2638_v38, %v3902_v18 }
 0x318   : > { %v1574_v41 = vmul.f32 %v3925_v34, %v1560_v47 }
 0x319   : > { %v2640_v27 = vpop.eup %2639 }
 0x31a   : > { %v1561_v53 = vmul.f32 %v2640_v27, %v3907_v29  ;;  %v3962_v39 = vadd.f32 %v3932_v1, %v1574_v41 }
 0x31c   : > { %v1575_v42 = vmul.f32 %v3925_v34, %v1561_v53 }
 0x31e   : > { %v3965_v19 = vadd.f32 %v3932_v1, %v1575_v42 }
 0x31f   : > { %v1529_v55 = vpop.xlane.xlu0 %1528 }
 0x320   : > { %v1538_v5 = vmul.f32 0.0078125, %v1529_v55  ;;  %v1594_v18 = vpack.c.bf16 %v3965_v19, %v3962_v39 }
 0x322   : > { %v1546_v46 = vadd.f32 1e-05, %v1538_v5  ;;  %1757 = vmatmul.mubr.bf16.gmra.mxu1 %v1594_v18 }
 0x323   : > { %v1531_v20 = vpop.xlane.xlu1 %1530  ;;  %1766 = vmatprep.mubr.bf16.mxu1 %v2879_v0 }
 0x324   : > { %2641 = vrsqrt.f32 %v1546_v46  ;;  %v1539_v44 = vmul.f32 0.0078125, %v1531_v20 }
 0x326   : > { %v1547_v29 = vadd.f32 1e-05, %v1539_v44 }
 0x328   : > { %2643 = vrsqrt.f32 %v1547_v29 }
 0x331   : > { %v2642_v25 = vpop.eup %2641 }
 0x332   : > { %v1562_v62 = vmul.f32 %v2642_v25, %v3912_v56  ;;  %v2577_v56 = vld [vmem:[#allocation10 + $0x48] sm:$0xff]  }
 0x333   : > { %2379 = vmatprep.subr.bf16.mxu0 %v2577_v56  ;;  %2413 = vmatprep.subr.bf16.mxu1 %v2577_v56 }
 0x334   : > { %v1576_v45 = vmul.f32 %v3925_v34, %v1562_v62  ;;  %2380 = vmatpush3.bf16.msra.mxu0 %v2578_v4  ;;  %2421 = vmatpush3.bf16.msra.mxu1 %v2578_v4 }
 0x335   : > { %v2644_v31 = vpop.eup %2643 }
 0x336   : > { %v1563_v52 = vmul.f32 %v2644_v31, %v3917_v11  ;;  %v3975_v37 = vadd.f32 %v3932_v1, %v1576_v45  ;;  %v2579_v11 = vld [vmem:[#allocation10 + $0x40] sm:$0xff]  }
 0x337   : > { %2381 = vmatprep.subr.bf16.mxu0 %v2579_v11  ;;  %2414 = vmatprep.subr.bf16.mxu1 %v2579_v11 }
 0x338   : > { %v1577_v58 = vmul.f32 %v3925_v34, %v1563_v52  ;;  %2382 = vmatpush3.bf16.msra.mxu0 %v2580_v59  ;;  %2422 = vmatpush3.bf16.msra.mxu1 %v2580_v59 }
 0x33a   : > { %v3978_v0 = vadd.f32 %v3932_v1, %v1577_v58 }
 0x33c   : > { %v1595_v50 = vpack.c.bf16 %v3978_v0, %v3975_v37 }
 0x33e   : > { %1767 = vmatmul.mubr.bf16.gmra.mxu1 %v1595_v50 }
 0x3aa   : > { %v1738_v34 = vpop.f32.mrf.mxu1 }
 0x3ab   : > { %v1739_v21 = vadd.f32 %v1738_v34, %v1617_v15 }
 0x3ac   : > { %v1740_v61 = vpop.f32.mrf.mxu1 }
 0x3ad   : > { %v1741_v60 = vadd.f32 %v1740_v61, %v1621_v3  ;;  %v1777_v32 = vmax.f32 %v1739_v21, 0.0 }
 0x3ae   : > { %v1742_v1 = vpop.f32.mrf.mxu1 }
 0x3af   : > { %v1743_v10 = vadd.f32 %v1742_v1, %v1617_v15  ;;  %v1778_v14 = vmax.f32 %v1741_v60, 0.0  ;;  %v2338_v60 = vld [vmem:[%s4118_s10] ss:$0 sm:$0xff] }
 0x3b0   : > { %v1744_v9 = vpop.f32.mrf.mxu1 }
 0x3b1   : > { %v1745_v30 = vadd.f32 %v1744_v9, %v1621_v3  ;;  %v1779_v17 = vmax.f32 %v1743_v10, 0.0 }
 0x3b3   : > { %v1780_v24 = vmax.f32 %v1745_v30, 0.0  ;;  %v1793_v63 = vpack.c.bf16 %v1779_v17, %v1777_v32 }
 0x3b5   : > { %v1794_v33 = vpack.c.bf16 %v1780_v24, %v1778_v14 }
 0x3b7   : > { %1968 = vmatprep.mubr.bf16.mxu0 %v1794_v33 }
 0x3b8   : > { %1969 = vmatmul.mubr.bf16.vlgmr.msra.gmra.mxu0 %v1793_v63 }
 0x3c6   : > { %v1748_v6 = vpop.f32.mrf.mxu1 }
 0x3c7   : > { %v1749_v13 = vadd.f32 %v1748_v6, %v1617_v15 }
 0x3c8   : > { %v1750_v26 = vpop.f32.mrf.mxu1 }
 0x3c9   : > { %v1751_v7 = vadd.f32 %v1750_v26, %v1621_v3  ;;  %v1781_v28 = vmax.f32 %v1749_v13, 0.0 }
 0x3ca   : > { %v1752_v12 = vpop.f32.mrf.mxu1 }
 0x3cb   : > { %v1753_v23 = vadd.f32 %v1752_v12, %v1617_v15  ;;  %v1782_v40 = vmax.f32 %v1751_v7, 0.0 }
 0x3cc   : > { %v1754_v51 = vpop.f32.mrf.mxu1 }
 0x3cd   : > { %v1755_v36 = vadd.f32 %v1754_v51, %v1621_v3  ;;  %v1783_v57 = vmax.f32 %v1753_v23, 0.0 }
 0x3cf   : > { %v1784_v35 = vmax.f32 %v1755_v36, 0.0  ;;  %v1795_v38 = vpack.c.bf16 %v1783_v57, %v1781_v28 }
 0x3d1   : > { %v1796_v22 = vpack.c.bf16 %v1784_v35, %v1782_v40 }
 0x3d3   : > { %1976 = vmatprep.mubr.bf16.mxu0 %v1796_v22 }
 0x3d4   : > { %1977 = vmatmul.mubr.bf16.gmra.mxu0 %v1795_v38 }
 0x3e2   : > { %v1758_v47 = vpop.f32.mrf.mxu1 }
 0x3e3   : > { %v1759_v42 = vadd.f32 %v1758_v47, %v1617_v15 }
 0x3e4   : > { %v1760_v27 = vpop.f32.mrf.mxu1 }
 0x3e5   : > { %v1761_v41 = vadd.f32 %v1760_v27, %v1621_v3  ;;  %v1785_v29 = vmax.f32 %v1759_v42, 0.0 }
 0x3e6   : > { %v1762_v53 = vpop.f32.mrf.mxu1 }
 0x3e7   : > { %v1763_v55 = vadd.f32 %v1762_v53, %v1617_v15  ;;  %v1786_v18 = vmax.f32 %v1761_v41, 0.0 }
 0x3e8   : > { %v1764_v5 = vpop.f32.mrf.mxu1 }
 0x3e9   : > { %v1765_v46 = vadd.f32 %v1764_v5, %v1621_v3  ;;  %v1787_v20 = vmax.f32 %v1763_v55, 0.0 }
 0x3eb   : > { %v1788_v44 = vmax.f32 %v1765_v46, 0.0  ;;  %v1797_v62 = vpack.c.bf16 %v1787_v20, %v1785_v29 }
 0x3ed   : > { %v1798_v25 = vpack.c.bf16 %v1788_v44, %v1786_v18 }
 0x3ef   : > { %1984 = vmatprep.mubr.bf16.mxu1 %v1798_v25 }
 0x3f0   : > { %1985 = vmatmul.mubr.bf16.vlgmr.msra.gmra.mxu1 %v1797_v62 }
 0x3fe   : > { %v1768_v43 = vpop.f32.mrf.mxu1 }
 0x3ff   : > { %v1769_v58 = vadd.f32 %v1768_v43, %v1617_v15 }
 0x400   : > { %v1770_v16 = vpop.f32.mrf.mxu1 }
 0x401   : > { %v1771_v52 = vadd.f32 %v1770_v16, %v1621_v3  ;;  %v1789_v48 = vmax.f32 %v1769_v58, 0.0 }
 0x402   : > { %v1772_v31 = vpop.f32.mrf.mxu1 }
 0x403   : > { %v1773_v45 = vadd.f32 %v1772_v31, %v1617_v15  ;;  %v1790_v11 = vmax.f32 %v1771_v52, 0.0 }
 0x404   : > { %v1774_v56 = vpop.f32.mrf.mxu1 }
 0x405   : > { %v1775_v4 = vadd.f32 %v1774_v56, %v1621_v3  ;;  %v1791_v50 = vmax.f32 %v1773_v45, 0.0 }
 0x407   : > { %v1792_v59 = vmax.f32 %v1775_v4, 0.0  ;;  %v1799_v61 = vpack.c.bf16 %v1791_v50, %v1789_v48 }
 0x409   : > { %v1800_v34 = vpack.c.bf16 %v1792_v59, %v1790_v11 }
 0x40b   : > { %1992 = vmatprep.mubr.bf16.mxu1 %v1800_v34 }
 0x40c   : > { %1993 = vmatmul.mubr.bf16.gmra.mxu1 %v1799_v61 }
 0x478   : > { %v2383_v1 = vpop.f32.mrf.mxu0 }
 0x47a   : > { %v2384_v10 = vpop.f32.mrf.mxu0 }
 0x47b   : > { %v2385_v21 = vadd.f32 %v2384_v10, %v2383_v1 }
 0x47c   : > { %v2386_v9 = vpop.f32.mrf.mxu0 }
 0x47d   : > { %v1971_v30 = vadd.f32 %v2385_v21, %v2338_v60 }
 0x47e   : > { %v2387_v15 = vpop.f32.mrf.mxu0 }
 0x47f   : > { %v2388_v17 = vadd.f32 %v2387_v15, %v2386_v9  ;;  %v2001_v3 = vadd.f32 %v1971_v30, %v3936_v54 }
 0x481   : > { %v1974_v14 = vadd.f32 %v2388_v17, %v2338_v60  ;;  %2011 = vadd.xlane.f32.xlu0 %v2001_v3 }
 0x483   : > { %v2002_v24 = vadd.f32 %v1974_v14, %v3939_v2 }
 0x485   : > { %2013 = vadd.xlane.f32.xlu1 %v2002_v24 }
 0x494   : > { %v2389_v32 = vpop.f32.mrf.mxu0 }
 0x496   : > { %v2390_v33 = vpop.f32.mrf.mxu0 }
 0x497   : > { %v2391_v63 = vadd.f32 %v2390_v33, %v2389_v32 }
 0x498   : > { %v2392_v6 = vpop.f32.mrf.mxu0 }
 0x499   : > { %v1979_v26 = vadd.f32 %v2391_v63, %v2338_v60 }
 0x49a   : > { %v2393_v12 = vpop.f32.mrf.mxu0 }
 0x49b   : > { %v2394_v7 = vadd.f32 %v2393_v12, %v2392_v6  ;;  %v2003_v23 = vadd.f32 %v1979_v26, %v3949_v49  ;;  %v4019_v12 = vld [vmem:[%s4119_s11] ss:$0 sm:$0xff] }
 0x49d   : > { %v1982_v13 = vadd.f32 %v2394_v7, %v2338_v60  ;;  %2015 = vadd.xlane.f32.xlu0 %v2003_v23 }
 0x49f   : > { %v2004_v51 = vadd.f32 %v1982_v13, %v3952_v8 }
 0x4a1   : > { %2017 = vadd.xlane.f32.xlu1 %v2004_v51 }
 0x4b0   : > { %v2395_v54 = vpop.f32.mrf.mxu1 }
 0x4b2   : > { %v2396_v36 = vpop.f32.mrf.mxu1 }
 0x4b3   : > { %v2397_v57 = vadd.f32 %v2396_v36, %v2395_v54 }
 0x4b4   : > { %v2398_v40 = vpop.f32.mrf.mxu1 }
 0x4b5   : > { %v1987_v2 = vadd.f32 %v2397_v57, %v2338_v60 }
 0x4b6   : > { %v2399_v35 = vpop.f32.mrf.mxu1 }
 0x4b7   : > { %v2400_v28 = vadd.f32 %v2399_v35, %v2398_v40  ;;  %v2005_v22 = vadd.f32 %v1987_v2, %v3962_v39 }
 0x4b9   : > { %v1990_v38 = vadd.f32 %v2400_v28, %v2338_v60  ;;  %2019 = vadd.xlane.f32.xlu0 %v2005_v22 }
 0x4bb   : > { %v2006_v47 = vadd.f32 %v1990_v38, %v3965_v19 }
 0x4bd   : > { %2021 = vadd.xlane.f32.xlu1 %v2006_v47 }
 0x4cc   : > { %v2401_v49 = vpop.f32.mrf.mxu1 }
 0x4ce   : > { %v2402_v27 = vpop.f32.mrf.mxu1 }
 0x4cf   : > { %v2403_v53 = vadd.f32 %v2402_v27, %v2401_v49 }
 0x4d0   : > { %v2404_v41 = vpop.f32.mrf.mxu1 }
 0x4d1   : > { %v1995_v8 = vadd.f32 %v2403_v53, %v2338_v60 }
 0x4d2   : > { %v2405_v55 = vpop.f32.mrf.mxu1 }
 0x4d3   : > { %v2406_v42 = vadd.f32 %v2405_v55, %v2404_v41  ;;  %v2007_v5 = vadd.f32 %v1995_v8, %v3975_v37 }
 0x4d5   : > { %v1998_v46 = vadd.f32 %v2406_v42, %v2338_v60  ;;  %2023 = vadd.xlane.f32.xlu0 %v2007_v5 }
 0x4d7   : > { %v2008_v20 = vadd.f32 %v1998_v46, %v3978_v0 }
 0x4d9   : > { %2025 = vadd.xlane.f32.xlu1 %v2008_v20 }
 0x50a   : > { %v2012_v39 = vpop.xlane.xlu0 %2011 }
 0x50b   : > { %v2027_v18 = vmul.f32 0.0078125, %v2012_v39 }
 0x50d   : > { %v2035_v44 = vsub.f32 %v2001_v3, %v2027_v18 }
 0x50e   : > { %v2014_v29 = vpop.xlane.xlu1 %2013 }
 0x50f   : > { %v2028_v19 = vmul.f32 0.0078125, %v2014_v29  ;;  %v2043_v25 = vmul.f32 %v2035_v44, %v2035_v44 }
 0x511   : > { %v2036_v62 = vsub.f32 %v2002_v24, %v2028_v19  ;;  %2051 = vadd.xlane.f32.xlu0 %v2043_v25 }
 0x513   : > { %v2044_v43 = vmul.f32 %v2036_v62, %v2036_v62 }
 0x515   : > { %2053 = vadd.xlane.f32.xlu1 %v2044_v43 }
 0x526   : > { %v2016_v16 = vpop.xlane.xlu0 %2015 }
 0x527   : > { %v2029_v31 = vmul.f32 0.0078125, %v2016_v16 }
 0x529   : > { %v2037_v52 = vsub.f32 %v2003_v23, %v2029_v31  ;;  %v4024_v23 = vld [vmem:[%s4120_s12] ss:$0 sm:$0xff] }
 0x52a   : > { %v2018_v45 = vpop.xlane.xlu1 %2017 }
 0x52b   : > { %v2030_v37 = vmul.f32 0.0078125, %v2018_v45  ;;  %v2045_v58 = vmul.f32 %v2037_v52, %v2037_v52 }
 0x52d   : > { %v2038_v56 = vsub.f32 %v2004_v51, %v2030_v37  ;;  %2055 = vadd.xlane.f32.xlu0 %v2045_v58 }
 0x52f   : > { %v2046_v0 = vmul.f32 %v2038_v56, %v2038_v56 }
 0x531   : > { %2057 = vadd.xlane.f32.xlu1 %v2046_v0 }
 0x542   : > { %v2020_v4 = vpop.xlane.xlu0 %2019 }
 0x543   : > { %v2031_v50 = vmul.f32 0.0078125, %v2020_v4 }
 0x545   : > { %v4000_v11 = vsub.f32 %v2005_v22, %v2031_v50 }
 0x546   : > { %v2022_v59 = vpop.xlane.xlu1 %2021 }
 0x547   : > { %v2032_v48 = vmul.f32 0.0078125, %v2022_v59  ;;  %v2047_v34 = vmul.f32 %v4000_v11, %v4000_v11 }
 0x549   : > { %v4004_v61 = vsub.f32 %v2006_v47, %v2032_v48  ;;  %2059 = vadd.xlane.f32.xlu0 %v2047_v34 }
 0x54b   : > { %v2048_v1 = vmul.f32 %v4004_v61, %v4004_v61 }
 0x54d   : > { %2061 = vadd.xlane.f32.xlu1 %v2048_v1 }
 0x55e   : > { %v2024_v60 = vpop.xlane.xlu0 %2023 }
 0x55f   : > { %v2033_v10 = vmul.f32 0.0078125, %v2024_v60 }
 0x561   : > { %v4008_v21 = vsub.f32 %v2007_v5, %v2033_v10 }
 0x562   : > { %v2026_v9 = vpop.xlane.xlu1 %2025 }
 0x563   : > { %v2034_v30 = vmul.f32 0.0078125, %v2026_v9  ;;  %v2049_v15 = vmul.f32 %v4008_v21, %v4008_v21 }
 0x565   : > { %v4012_v17 = vsub.f32 %v2008_v20, %v2034_v30  ;;  %2063 = vadd.xlane.f32.xlu0 %v2049_v15 }
 0x567   : > { %v2050_v3 = vmul.f32 %v4012_v17, %v4012_v17 }
 0x569   : > { %2065 = vadd.xlane.f32.xlu1 %v2050_v3 }
 0x59a   : > { %v2052_v14 = vpop.xlane.xlu0 %2051 }
 0x59b   : > { %v2067_v24 = vmul.f32 0.0078125, %v2052_v14 }
 0x59d   : > { %v2075_v32 = vadd.f32 1e-05, %v2067_v24 }
 0x59e   : > { %v2054_v33 = vpop.xlane.xlu1 %2053 }
 0x59f   : > { %2645 = vrsqrt.f32 %v2075_v32  ;;  %v2068_v63 = vmul.f32 0.0078125, %v2054_v33 }
 0x5a1   : > { %v2076_v6 = vadd.f32 1e-05, %v2068_v63 }
 0x5a3   : > { %2647 = vrsqrt.f32 %v2076_v6 }
 0x5ac   : > { %v2646_v26 = vpop.eup %2645 }
 0x5ad   : > { %v2091_v7 = vmul.f32 %v2646_v26, %v2035_v44 }
 0x5af   : > { %v2105_v13 = vmul.f32 %v4019_v12, %v2091_v7 }
 0x5b0   : > { %v2648_v51 = vpop.eup %2647 }
 0x5b1   : > { %v2119_v54 = vadd.f32 %v4024_v23, %v2105_v13  ;;  %v2092_v36 = vmul.f32 %v2648_v51, %v2036_v62 }
 0x5b3   : > { %2127 = vst [vmem:[%s4030_s25] sm:$0xff] %v2119_v54  ;;  %v2106_v57 = vmul.f32 %v4019_v12, %v2092_v36 }
 0x5b5   : > { %v2120_v2 = vadd.f32 %v4024_v23, %v2106_v57 }
 0x5b6   : > { %v2056_v40 = vpop.xlane.xlu0 %2055 }
 0x5b7   : > { %v2069_v35 = vmul.f32 0.0078125, %v2056_v40  ;;  %2128 = vst [vmem:[%s4030_s25 + $0x8] sm:$0xff] %v2120_v2 }
 0x5b9   : > { %v2077_v28 = vadd.f32 1e-05, %v2069_v35 }
 0x5ba   : > { %v2058_v22 = vpop.xlane.xlu1 %2057 }
 0x5bb   : > { %2649 = vrsqrt.f32 %v2077_v28  ;;  %v2070_v38 = vmul.f32 0.0078125, %v2058_v22 }
 0x5bd   : > { %v2078_v47 = vadd.f32 1e-05, %v2070_v38 }
 0x5bf   : > { %2651 = vrsqrt.f32 %v2078_v47 }
 0x5c8   : > { %v2650_v49 = vpop.eup %2649 }
 0x5c9   : > { %v2093_v27 = vmul.f32 %v2650_v49, %v2037_v52 }
 0x5cb   : > { %v2107_v53 = vmul.f32 %v4019_v12, %v2093_v27 }
 0x5cc   : > { %v2652_v41 = vpop.eup %2651 }
 0x5cd   : > { %v2121_v8 = vadd.f32 %v4024_v23, %v2107_v53  ;;  %v2094_v55 = vmul.f32 %v2652_v41, %v2038_v56 }
 0x5cf   : > { %2129 = vst [vmem:[%s4030_s25 + $0x10] sm:$0xff] %v2121_v8  ;;  %v2108_v42 = vmul.f32 %v4019_v12, %v2094_v55 }
 0x5d1   : > { %v2122_v5 = vadd.f32 %v4024_v23, %v2108_v42 }
 0x5d2   : > { %v2060_v46 = vpop.xlane.xlu0 %2059 }
 0x5d3   : > { %2130 = vst [vmem:[%s4030_s25 + $0x18] sm:$0xff] %v2122_v5  ;;  %v2071_v20 = vmul.f32 0.0078125, %v2060_v46 }
 0x5d5   : > { %v2079_v39 = vadd.f32 1e-05, %v2071_v20 }
 0x5d6   : > { %v2062_v18 = vpop.xlane.xlu1 %2061 }
 0x5d7   : > { %2653 = vrsqrt.f32 %v2079_v39  ;;  %v2072_v44 = vmul.f32 0.0078125, %v2062_v18 }
 0x5d9   : > { %v2080_v29 = vadd.f32 1e-05, %v2072_v44 }
 0x5db   : > { %2655 = vrsqrt.f32 %v2080_v29 }
 0x5e4   : > { %v2654_v19 = vpop.eup %2653 }
 0x5e5   : > { %v2095_v25 = vmul.f32 %v2654_v19, %v4000_v11 }
 0x5e7   : > { %v2109_v62 = vmul.f32 %v4019_v12, %v2095_v25 }
 0x5e8   : > { %v2656_v43 = vpop.eup %2655 }
 0x5e9   : > { %v2123_v16 = vadd.f32 %v4024_v23, %v2109_v62  ;;  %v2096_v31 = vmul.f32 %v2656_v43, %v4004_v61 }
 0x5eb   : > { %2131 = vst [vmem:[%s4030_s25 + $0x20] sm:$0xff] %v2123_v16  ;;  %v2110_v52 = vmul.f32 %v4019_v12, %v2096_v31 }
 0x5ed   : > { %v2124_v58 = vadd.f32 %v4024_v23, %v2110_v52 }
 0x5ee   : > { %v2064_v45 = vpop.xlane.xlu0 %2063 }
 0x5ef   : > { %v2073_v37 = vmul.f32 0.0078125, %v2064_v45  ;;  %2132 = vst [vmem:[%s4030_s25 + $0x28] sm:$0xff] %v2124_v58 }
 0x5f1   : > { %v2081_v56 = vadd.f32 1e-05, %v2073_v37 }
 0x5f2   : > { %v2066_v0 = vpop.xlane.xlu1 %2065 }
 0x5f3   : > { %2657 = vrsqrt.f32 %v2081_v56  ;;  %v2074_v4 = vmul.f32 0.0078125, %v2066_v0 }
 0x5f5   : > { %v2082_v50 = vadd.f32 1e-05, %v2074_v4 }
 0x5f7   : > { %2659 = vrsqrt.f32 %v2082_v50 }
 0x600   : > { %v2658_v11 = vpop.eup %2657 }
 0x601   : > { %v2097_v59 = vmul.f32 %v2658_v11, %v4008_v21 }
 0x603   : > { %v2111_v48 = vmul.f32 %v4019_v12, %v2097_v59 }
 0x604   : > { %v2660_v34 = vpop.eup %2659 }
 0x605   : > { %v2125_v61 = vadd.f32 %v4024_v23, %v2111_v48  ;;  %v2098_v1 = vmul.f32 %v2660_v34, %v4012_v17 }
 0x607   : > { %2133 = vst [vmem:[%s4030_s25 + $0x30] sm:$0xff] %v2125_v61  ;;  %v2112_v60 = vmul.f32 %v4019_v12, %v2098_v1 }
 0x609   : > { %v2126_v10 = vadd.f32 %v4024_v23, %v2112_v60 }
 0x60b   : > { %2134 = vst [vmem:[%s4030_s25 + $0x38] sm:$0xff] %v2126_v10 }
 0x60c   : > { %2809 = shalt.err (!%p2806_p5)
}
 0x60d   : > { %s2810_s1 = scalar_lea.hbm %s4061_s19, 1024  ;;  %s2814_s16 = scalar_lea.hbm %s4121_s13, 2048 }
 0x60e   : > { %p2811_p6 = scmp.ne.s32.totalorder %s4061_s19, %s2810_s1  ;;  %p2815_p13 = scmp.lt.s32.totalorder %s4061_s19, %s4121_s13 }
 0x60f   : > { %p2816_p2 = scmp.lt.s32.totalorder %s2814_s16, %s2810_s1 }
 0x610   : > { %p2812_p4 = pnand %p2811_p6, %p4208_p12 }
 0x611   : > { %p2817_p3 = por %p2816_p2, %p2815_p13 }
 0x612   : > { %p2813_p8 = pneg %p2812_p4 }
 0x614   : > { %p2818_p10 = pnand %p2817_p3, %p2813_p8 }
 0x616   : > { %2821 = shalt.err (!%p2818_p10)
}
 0x617   : > { %s2881_s23 = smov 128   ;;  %s2882_s21 = smov 8  }
 0x618   : > { %2441 = dma.vmem_to_hbm [thread:$0]  (%p4208_p12), %s4063_s22, 1024, %s4061_s19, %s2136_s20, %s2881_s23, %s2881_s23, %s2882_s21  }
 0x619 PF: > { %s4209_s7 = sld [smem:[#allocation16_spill]]  ;;  %p4212_p1 = scmp.ge.s32.totalorder %s2868_s28, 2 }
 0x61a   : > { %s4210_s29 = sld [smem:[#allocation17_spill]] }
 0x61f   : > { %s2165_s24 = sand.u32 1, %s4209_s7  }
 0x620   : > { %p4211_p7 = scmp.ne.s32.totalorder %s4210_s29, 0  ;;  %s2166_s18 = scalar_lea.sflag [#allocation4], %s2165_s24 }
 0x622   : > { %p2461_p9 = pnand %p4212_p1, %p4211_p7 }
 0x624   : > { %p2462_p0 = pneg %p2461_p9 }
 0x626   : > { %2851 = dma.done.wait (%p2462_p0), %s2166_s18, 1024  }
 0x627   : > { %2853 = vsyncadd (%p2462_p0), %s2166_s18, 4294966272  ;;  %s4213_s1 = sld [smem:[#allocation18_spill]]  ;;  %p28_p11 = scmp.ge.s32.totalorder %s3050_s15, 4  }
 0x628   : > { %s4214_s25 = smov %s2860_s26  ;;  %s4215_s26 = smov %s2864_s27 }
 0x629   : > { %s4217_s28 = smov %s3050_s15  ;;  %30 = sbr.rel (!%p28_p11) target bundleno = 12 (0xc), region = 133 }
 0x62d   : > { %s4216_s27 = smov %s4213_s1 }
 0x62e   :  { %2171 = vsyncpa [#allocation3], 1 }
 0x62f   :  { %2173 = vsyncpa [#allocation3 + $0x1], 1 }
 0x630   :  { %2174 = vsyncpa [#allocation6], 1 }
 0x631   :  { %2175 = vsyncpa [#allocation9], 1 }
 0x632   :  { %2176 = vsyncpa [#allocation4], 1 }
 0x633   :  { %2178 = vsyncpa [#allocation4 + $0x1], 1 }

</bundles_post_ra>
